<compile_context>
chip_gen: v7x
topology: tpu7x:2x2x1
jax: 0.10.0
libtpu: 0.0.40
codegen_flags: <defaults>
</compile_context>

<pallas_src>
import functools

import jax
import jax.numpy as jnp
from jax.experimental import pallas as pl
from jax.experimental.pallas import tpu as pltpu


def _round_up(x, m):
    return (x + m - 1) // m * m


def _conv2d_kernel(x_ref, w_ref, b_ref, o_ref, *,
                   KH, KW, OH, OW, stride, dilation, act):
    """One (batch image) x (OC tile) output block; kh/kw reduction unrolled.

    x_ref: (1, Hp, Wp, C)   padded NHWC image (compute dtype)
    w_ref: (KH*KW, C, TN)   reshaped weight   (compute dtype)
    b_ref: (1, TN)          conv bias         (f32)
    o_ref: (1, OH*OW, TN)   output block      (out dtype)
    """
    C = w_ref.shape[1]
    TN = w_ref.shape[2]
    rows = OH * OW

    # f32 accumulator initialized with the broadcast bias (epilogue stays f32).
    acc = jnp.broadcast_to(b_ref[...], (rows, TN)).astype(jnp.float32)

    for kh in range(KH):
        for kw in range(KW):
            h0 = kh * dilation
            w0 = kw * dilation
            if stride == 1:
                win = x_ref[0, pl.ds(h0, OH), pl.ds(w0, OW), :]
            else:
                win = x_ref[0, pl.ds(h0, OH, stride=stride),
                            pl.ds(w0, OW, stride=stride), :]
            lhs = win.reshape(rows, C)                      # in-VMEM "im2col"
            acc = acc + jnp.dot(lhs, w_ref[kh * KW + kw],
                                preferred_element_type=jnp.float32)

    if act is not None:
        acc = act(acc)
    o_ref[0] = acc.astype(o_ref.dtype)


def conv2d(x, weight, bias=None, *, stride=1, padding=0, dilation=1,
           activation=None, compute_dtype=jnp.bfloat16):
    """x: (N, C, H, W). weight: (OC, C, KH, KW). bias: (OC,) or None.

    Returns (N, OC, OH, OW), matching torch.nn.Conv2d(+activation) forward.
    Operands are fed to the MXU in `compute_dtype` (bf16 by default);
    accumulation, bias add and activation are f32.
    """
    N, C, H, W = x.shape
    OC, C_in, KH, KW = weight.shape
    assert C_in == C
    s, p, d = int(stride), int(padding), int(dilation)

    OH = (H + 2 * p - d * (KH - 1) - 1) // s + 1
    OW = (W + 2 * p - d * (KW - 1) - 1) // s + 1
    Hp, Wp = H + 2 * p, W + 2 * p

    out_dtype = x.dtype
    if bias is None:
        bias = jnp.zeros((OC,), jnp.float32)

    # ---- host-side prep: NHWC + zero-pad only (no im2col) -------------------
    x_nhwc = jnp.transpose(x, (0, 2, 3, 1)).astype(compute_dtype)
    xp = jnp.pad(x_nhwc, ((0, 0), (p, p), (p, p), (0, 0)))

    # weight -> (KH*KW, C, OC_pad), column order matches the kernel's windows.
    OC_pad = _round_up(OC, 128)
    w = jnp.transpose(weight, (2, 3, 1, 0)).reshape(KH * KW, C, OC)
    w = jnp.pad(w, ((0, 0), (0, 0), (0, OC_pad - OC))).astype(compute_dtype)
    b = jnp.pad(bias.astype(jnp.float32).reshape(1, OC),
                ((0, 0), (0, OC_pad - OC)))

    # OC tile: cover the whole padded OC when it fits in <= 512 lanes.
    if OC_pad <= 512:
        TN = OC_pad
    elif OC_pad % 512 == 0:
        TN = 512
    elif OC_pad % 256 == 0:
        TN = 256
    else:
        TN = 128

    grid = (N, OC_pad // TN)
    kernel = functools.partial(_conv2d_kernel, KH=KH, KW=KW, OH=OH, OW=OW,
                               stride=s, dilation=d, act=activation)

    itemsize = jnp.dtype(compute_dtype).itemsize
    flops = 2 * N * OH * OW * KH * KW * C * OC_pad
    bytes_accessed = (xp.size * itemsize + w.size * itemsize
                      + b.size * 4
                      + N * OH * OW * OC_pad * jnp.dtype(out_dtype).itemsize)

    y = pl.pallas_call(
        kernel,
        out_shape=jax.ShapeDtypeStruct((N, OH * OW, OC_pad), out_dtype),
        grid_spec=pltpu.PrefetchScalarGridSpec(
            num_scalar_prefetch=0,
            grid=grid,
            in_specs=[
                # padded image: one batch element per step, full spatial + C
                pl.BlockSpec((1, Hp, Wp, C), lambda n, j: (n, 0, 0, 0)),
                # reshaped weight: full (kh*kw, C), tiled over OC
                pl.BlockSpec((KH * KW, C, TN), lambda n, j: (0, 0, j)),
                # conv bias (f32)
                pl.BlockSpec((1, TN), lambda n, j: (0, j)),
            ],
            out_specs=pl.BlockSpec((1, OH * OW, TN), lambda n, j: (n, 0, j)),
        ),
        compiler_params=pltpu.CompilerParams(
            dimension_semantics=("parallel", "parallel"),
            vmem_limit_bytes=48 * 1024 * 1024),
        cost_estimate=pl.CostEstimate(
            flops=flops, transcendentals=0, bytes_accessed=bytes_accessed),
    )(xp, w, b)

    # (N, OH*OW, OC_pad) -> (N, OH, OW, OC) -> NCHW (module contract)
    y = y[:, :, :OC].reshape(N, OH, OW, OC)
    return jnp.transpose(y, (0, 3, 1, 2))


def _reference(x, weight, bias, *, stride, padding, dilation):
    y = jax.lax.conv_general_dilated(
        x, weight, window_strides=(stride, stride),
        padding=[(padding, padding), (padding, padding)],
        rhs_dilation=(dilation, dilation),
        dimension_numbers=("NCHW", "OIHW", "NCHW"))
    return y + bias.reshape(1, -1, 1, 1)


if __name__ == "__main__":
    key = jax.random.PRNGKey(0)
    k_x, k_w, k_b = jax.random.split(key, 3)

    # Conv2d(input_channels=4, output_channels=8, kernel_size=3, stride=1, padding=1)
    N, C, H, Wd = 2, 4, 16, 16
    OC, KH, KW = 8, 3, 3
    stride, padding, dilation = 1, 1, 1

    x = jax.random.normal(k_x, (N, C, H, Wd), dtype=jnp.float32)
    fan_in = C * KH * KW
    bound = 1.0 / (fan_in ** 0.5)
    weight = jax.random.uniform(k_w, (OC, C, KH, KW), jnp.float32, -bound, bound)
    bias = jax.random.uniform(k_b, (OC,), jnp.float32, -bound, bound)

    ref = _reference(x, weight, bias, stride=stride, padding=padding,
                     dilation=dilation)

    # f32 operands: tight numerical parity with the PyTorch module
    out_f32 = conv2d(x, weight, bias, stride=stride, padding=padding,
                     dilation=dilation, activation=None,
                     compute_dtype=jnp.float32)
    out_f32 = jax.block_until_ready(out_f32)
    assert out_f32.shape == (N, OC, H, Wd)
    assert jnp.max(jnp.abs(out_f32 - ref)) < 1e-4

    # default bf16 operands (f32 accumulation) — MXU fast path on v6e/v7x
    out_bf16 = jax.block_until_ready(
        conv2d(x, weight, bias, stride=stride, padding=padding,
               dilation=dilation, activation=None))
    assert out_bf16.shape == (N, OC, H, Wd)
    assert jnp.max(jnp.abs(out_bf16 - ref)) < 3e-2

    # fused-activation path (ReLU), applied in the f32 epilogue
    relu = lambda v: jnp.maximum(v, 0.0)
    out_act = jax.block_until_ready(
        conv2d(x, weight, bias, stride=stride, padding=padding,
               dilation=dilation, activation=relu))
    assert jnp.max(jnp.abs(out_act - jnp.maximum(ref, 0.0))) < 3e-2

    print("KERNEL_OK")
</pallas_src>

<mosaic_0001>
module attributes {stable_mosaic.version = 11 : i64} {
  func.func @_conv2d_kernel(%arg0: i32, %arg1: i32, %arg2: memref<1x18x18x4xf32, #tpu.memory_space<vmem>>, %arg3: memref<9x4x128xf32, #tpu.memory_space<vmem>>, %arg4: memref<1x128xf32, #tpu.memory_space<vmem>>, %arg5: memref<1x256x128xf32, #tpu.memory_space<vmem>>) attributes {dimension_semantics = [#tpu.dimension_semantics<parallel>, #tpu.dimension_semantics<parallel>], iteration_bounds = array<i64: 2, 1>, scalar_prefetch = 0 : i64, scratch_operands = 0 : i64, tpu.core_type = #tpu.core_type<tc>, window_params = [{transform_indices = @transform_0, window_bounds = array<i64: 1, 18, 18, 4>}, {transform_indices = @transform_1, window_bounds = array<i64: 9, 4, 128>}, {transform_indices = @transform_2, window_bounds = array<i64: 1, 128>}, {transform_indices = @transform_3, window_bounds = array<i64: 1, 256, 128>}]} {
    %c0 = arith.constant 0 : index
    %c0_0 = arith.constant 0 : index
    %0 = vector.load %arg4[%c0, %c0_0] : memref<1x128xf32, #tpu.memory_space<vmem>>, vector<1x128xf32>
    %1 = vector.shape_cast %0 : vector<1x128xf32> to vector<1x128xf32>
    %2 = vector.broadcast %1 : vector<1x128xf32> to vector<256x128xf32>
    %c0_1 = arith.constant 0 : index
    %c0_2 = arith.constant 0 : index
    %c0_3 = arith.constant 0 : index
    %c0_4 = arith.constant 0 : index
    %3 = vector.load %arg2[%c0_1, %c0_2, %c0_3, %c0_4] : memref<1x18x18x4xf32, #tpu.memory_space<vmem>>, vector<1x16x16x4xf32>
    %4 = vector.shape_cast %3 : vector<1x16x16x4xf32> to vector<16x16x4xf32>
    %5 = vector.shape_cast %4 : vector<16x16x4xf32> to vector<256x4xf32>
    %c0_5 = arith.constant 0 : index
    %c0_6 = arith.constant 0 : index
    %c0_7 = arith.constant 0 : index
    %6 = vector.load %arg3[%c0_5, %c0_6, %c0_7] : memref<9x4x128xf32, #tpu.memory_space<vmem>>, vector<1x4x128xf32>
    %7 = vector.shape_cast %6 : vector<1x4x128xf32> to vector<4x128xf32>
    %cst = arith.constant dense<0.000000e+00> : vector<256x128xf32>
    %8 = tpu.matmul %5, %7, %cst {dimension_numbers = #tpu.dot_dimension_numbers<[1], [0], [0], [1], [0, 0, 1, 1], [], []>} : vector<256x4xf32>, vector<4x128xf32>, vector<256x128xf32> -> vector<256x128xf32>
    %9 = arith.addf %2, %8 : vector<256x128xf32>
    %c0_8 = arith.constant 0 : index
    %c0_9 = arith.constant 0 : index
    %c1 = arith.constant 1 : index
    %c0_10 = arith.constant 0 : index
    %10 = vector.load %arg2[%c0_8, %c0_9, %c1, %c0_10] : memref<1x18x18x4xf32, #tpu.memory_space<vmem>>, vector<1x16x16x4xf32>
    %11 = vector.shape_cast %10 : vector<1x16x16x4xf32> to vector<16x16x4xf32>
    %12 = vector.shape_cast %11 : vector<16x16x4xf32> to vector<256x4xf32>
    %c1_11 = arith.constant 1 : index
    %c0_12 = arith.constant 0 : index
    %c0_13 = arith.constant 0 : index
    %13 = vector.load %arg3[%c1_11, %c0_12, %c0_13] : memref<9x4x128xf32, #tpu.memory_space<vmem>>, vector<1x4x128xf32>
    %14 = vector.shape_cast %13 : vector<1x4x128xf32> to vector<4x128xf32>
    %cst_14 = arith.constant dense<0.000000e+00> : vector<256x128xf32>
    %15 = tpu.matmul %12, %14, %cst_14 {dimension_numbers = #tpu.dot_dimension_numbers<[1], [0], [0], [1], [0, 0, 1, 1], [], []>} : vector<256x4xf32>, vector<4x128xf32>, vector<256x128xf32> -> vector<256x128xf32>
    %16 = arith.addf %9, %15 : vector<256x128xf32>
    %c0_15 = arith.constant 0 : index
    %c0_16 = arith.constant 0 : index
    %c2 = arith.constant 2 : index
    %c0_17 = arith.constant 0 : index
    %17 = vector.load %arg2[%c0_15, %c0_16, %c2, %c0_17] : memref<1x18x18x4xf32, #tpu.memory_space<vmem>>, vector<1x16x16x4xf32>
    %18 = vector.shape_cast %17 : vector<1x16x16x4xf32> to vector<16x16x4xf32>
    %19 = vector.shape_cast %18 : vector<16x16x4xf32> to vector<256x4xf32>
    %c2_18 = arith.constant 2 : index
    %c0_19 = arith.constant 0 : index
    %c0_20 = arith.constant 0 : index
    %20 = vector.load %arg3[%c2_18, %c0_19, %c0_20] : memref<9x4x128xf32, #tpu.memory_space<vmem>>, vector<1x4x128xf32>
    %21 = vector.shape_cast %20 : vector<1x4x128xf32> to vector<4x128xf32>
    %cst_21 = arith.constant dense<0.000000e+00> : vector<256x128xf32>
    %22 = tpu.matmul %19, %21, %cst_21 {dimension_numbers = #tpu.dot_dimension_numbers<[1], [0], [0], [1], [0, 0, 1, 1], [], []>} : vector<256x4xf32>, vector<4x128xf32>, vector<256x128xf32> -> vector<256x128xf32>
    %23 = arith.addf %16, %22 : vector<256x128xf32>
    %c0_22 = arith.constant 0 : index
    %c1_23 = arith.constant 1 : index
    %c0_24 = arith.constant 0 : index
    %c0_25 = arith.constant 0 : index
    %24 = vector.load %arg2[%c0_22, %c1_23, %c0_24, %c0_25] : memref<1x18x18x4xf32, #tpu.memory_space<vmem>>, vector<1x16x16x4xf32>
    %25 = vector.shape_cast %24 : vector<1x16x16x4xf32> to vector<16x16x4xf32>
    %26 = vector.shape_cast %25 : vector<16x16x4xf32> to vector<256x4xf32>
    %c3 = arith.constant 3 : index
    %c0_26 = arith.constant 0 : index
    %c0_27 = arith.constant 0 : index
    %27 = vector.load %arg3[%c3, %c0_26, %c0_27] : memref<9x4x128xf32, #tpu.memory_space<vmem>>, vector<1x4x128xf32>
    %28 = vector.shape_cast %27 : vector<1x4x128xf32> to vector<4x128xf32>
    %cst_28 = arith.constant dense<0.000000e+00> : vector<256x128xf32>
    %29 = tpu.matmul %26, %28, %cst_28 {dimension_numbers = #tpu.dot_dimension_numbers<[1], [0], [0], [1], [0, 0, 1, 1], [], []>} : vector<256x4xf32>, vector<4x128xf32>, vector<256x128xf32> -> vector<256x128xf32>
    %30 = arith.addf %23, %29 : vector<256x128xf32>
    %c0_29 = arith.constant 0 : index
    %c1_30 = arith.constant 1 : index
    %c1_31 = arith.constant 1 : index
    %c0_32 = arith.constant 0 : index
    %31 = vector.load %arg2[%c0_29, %c1_30, %c1_31, %c0_32] : memref<1x18x18x4xf32, #tpu.memory_space<vmem>>, vector<1x16x16x4xf32>
    %32 = vector.shape_cast %31 : vector<1x16x16x4xf32> to vector<16x16x4xf32>
    %33 = vector.shape_cast %32 : vector<16x16x4xf32> to vector<256x4xf32>
    %c4 = arith.constant 4 : index
    %c0_33 = arith.constant 0 : index
    %c0_34 = arith.constant 0 : index
    %34 = vector.load %arg3[%c4, %c0_33, %c0_34] : memref<9x4x128xf32, #tpu.memory_space<vmem>>, vector<1x4x128xf32>
    %35 = vector.shape_cast %34 : vector<1x4x128xf32> to vector<4x128xf32>
    %cst_35 = arith.constant dense<0.000000e+00> : vector<256x128xf32>
    %36 = tpu.matmul %33, %35, %cst_35 {dimension_numbers = #tpu.dot_dimension_numbers<[1], [0], [0], [1], [0, 0, 1, 1], [], []>} : vector<256x4xf32>, vector<4x128xf32>, vector<256x128xf32> -> vector<256x128xf32>
    %37 = arith.addf %30, %36 : vector<256x128xf32>
    %c0_36 = arith.constant 0 : index
    %c1_37 = arith.constant 1 : index
    %c2_38 = arith.constant 2 : index
    %c0_39 = arith.constant 0 : index
    %38 = vector.load %arg2[%c0_36, %c1_37, %c2_38, %c0_39] : memref<1x18x18x4xf32, #tpu.memory_space<vmem>>, vector<1x16x16x4xf32>
    %39 = vector.shape_cast %38 : vector<1x16x16x4xf32> to vector<16x16x4xf32>
    %40 = vector.shape_cast %39 : vector<16x16x4xf32> to vector<256x4xf32>
    %c5 = arith.constant 5 : index
    %c0_40 = arith.constant 0 : index
    %c0_41 = arith.constant 0 : index
    %41 = vector.load %arg3[%c5, %c0_40, %c0_41] : memref<9x4x128xf32, #tpu.memory_space<vmem>>, vector<1x4x128xf32>
    %42 = vector.shape_cast %41 : vector<1x4x128xf32> to vector<4x128xf32>
    %cst_42 = arith.constant dense<0.000000e+00> : vector<256x128xf32>
    %43 = tpu.matmul %40, %42, %cst_42 {dimension_numbers = #tpu.dot_dimension_numbers<[1], [0], [0], [1], [0, 0, 1, 1], [], []>} : vector<256x4xf32>, vector<4x128xf32>, vector<256x128xf32> -> vector<256x128xf32>
    %44 = arith.addf %37, %43 : vector<256x128xf32>
    %c0_43 = arith.constant 0 : index
    %c2_44 = arith.constant 2 : index
    %c0_45 = arith.constant 0 : index
    %c0_46 = arith.constant 0 : index
    %45 = vector.load %arg2[%c0_43, %c2_44, %c0_45, %c0_46] : memref<1x18x18x4xf32, #tpu.memory_space<vmem>>, vector<1x16x16x4xf32>
    %46 = vector.shape_cast %45 : vector<1x16x16x4xf32> to vector<16x16x4xf32>
    %47 = vector.shape_cast %46 : vector<16x16x4xf32> to vector<256x4xf32>
    %c6 = arith.constant 6 : index
    %c0_47 = arith.constant 0 : index
    %c0_48 = arith.constant 0 : index
    %48 = vector.load %arg3[%c6, %c0_47, %c0_48] : memref<9x4x128xf32, #tpu.memory_space<vmem>>, vector<1x4x128xf32>
    %49 = vector.shape_cast %48 : vector<1x4x128xf32> to vector<4x128xf32>
    %cst_49 = arith.constant dense<0.000000e+00> : vector<256x128xf32>
    %50 = tpu.matmul %47, %49, %cst_49 {dimension_numbers = #tpu.dot_dimension_numbers<[1], [0], [0], [1], [0, 0, 1, 1], [], []>} : vector<256x4xf32>, vector<4x128xf32>, vector<256x128xf32> -> vector<256x128xf32>
    %51 = arith.addf %44, %50 : vector<256x128xf32>
    %c0_50 = arith.constant 0 : index
    %c2_51 = arith.constant 2 : index
    %c1_52 = arith.constant 1 : index
    %c0_53 = arith.constant 0 : index
    %52 = vector.load %arg2[%c0_50, %c2_51, %c1_52, %c0_53] : memref<1x18x18x4xf32, #tpu.memory_space<vmem>>, vector<1x16x16x4xf32>
    %53 = vector.shape_cast %52 : vector<1x16x16x4xf32> to vector<16x16x4xf32>
    %54 = vector.shape_cast %53 : vector<16x16x4xf32> to vector<256x4xf32>
    %c7 = arith.constant 7 : index
    %c0_54 = arith.constant 0 : index
    %c0_55 = arith.constant 0 : index
    %55 = vector.load %arg3[%c7, %c0_54, %c0_55] : memref<9x4x128xf32, #tpu.memory_space<vmem>>, vector<1x4x128xf32>
    %56 = vector.shape_cast %55 : vector<1x4x128xf32> to vector<4x128xf32>
    %cst_56 = arith.constant dense<0.000000e+00> : vector<256x128xf32>
    %57 = tpu.matmul %54, %56, %cst_56 {dimension_numbers = #tpu.dot_dimension_numbers<[1], [0], [0], [1], [0, 0, 1, 1], [], []>} : vector<256x4xf32>, vector<4x128xf32>, vector<256x128xf32> -> vector<256x128xf32>
    %58 = arith.addf %51, %57 : vector<256x128xf32>
    %c0_57 = arith.constant 0 : index
    %c2_58 = arith.constant 2 : index
    %c2_59 = arith.constant 2 : index
    %c0_60 = arith.constant 0 : index
    %59 = vector.load %arg2[%c0_57, %c2_58, %c2_59, %c0_60] : memref<1x18x18x4xf32, #tpu.memory_space<vmem>>, vector<1x16x16x4xf32>
    %60 = vector.shape_cast %59 : vector<1x16x16x4xf32> to vector<16x16x4xf32>
    %61 = vector.shape_cast %60 : vector<16x16x4xf32> to vector<256x4xf32>
    %c8 = arith.constant 8 : index
    %c0_61 = arith.constant 0 : index
    %c0_62 = arith.constant 0 : index
    %62 = vector.load %arg3[%c8, %c0_61, %c0_62] : memref<9x4x128xf32, #tpu.memory_space<vmem>>, vector<1x4x128xf32>
    %63 = vector.shape_cast %62 : vector<1x4x128xf32> to vector<4x128xf32>
    %cst_63 = arith.constant dense<0.000000e+00> : vector<256x128xf32>
    %64 = tpu.matmul %61, %63, %cst_63 {dimension_numbers = #tpu.dot_dimension_numbers<[1], [0], [0], [1], [0, 0, 1, 1], [], []>} : vector<256x4xf32>, vector<4x128xf32>, vector<256x128xf32> -> vector<256x128xf32>
    %65 = arith.addf %58, %64 : vector<256x128xf32>
    %c0_64 = arith.constant 0 : index
    %c0_65 = arith.constant 0 : index
    %c0_66 = arith.constant 0 : index
    %66 = vector.load %arg5[%c0_64, %c0_65, %c0_66] : memref<1x256x128xf32, #tpu.memory_space<vmem>>, vector<1x256x128xf32>
    %67 = vector.shape_cast %66 : vector<1x256x128xf32> to vector<256x128xf32>
    %68 = vector.shape_cast %65 : vector<256x128xf32> to vector<1x256x128xf32>
    tpu.vector_store %arg5[%c0_64, %c0_65, %c0_66], %68 {strides = array<i32>} : memref<1x256x128xf32, #tpu.memory_space<vmem>>, vector<1x256x128xf32>,
    return
  }
  func.func @transform_0(%arg0: i32, %arg1: i32) -> (i32, i32, i32, i32) {
    %c0_i32 = arith.constant 0 : i32
    %c0_i32_0 = arith.constant 0 : i32
    %c0_i32_1 = arith.constant 0 : i32
    %c0_i32_2 = arith.constant 0 : i32
    return %arg0, %c0_i32, %c0_i32_0, %c0_i32_1 : i32, i32, i32, i32
  }
  func.func @transform_1(%arg0: i32, %arg1: i32) -> (i32, i32, i32) {
    %c0_i32 = arith.constant 0 : i32
    %c0_i32_0 = arith.constant 0 : i32
    %c0_i32_1 = arith.constant 0 : i32
    return %c0_i32, %c0_i32_0, %arg1 : i32, i32, i32
  }
  func.func @transform_2(%arg0: i32, %arg1: i32) -> (i32, i32) {
    %c0_i32 = arith.constant 0 : i32
    %c0_i32_0 = arith.constant 0 : i32
    return %c0_i32, %arg1 : i32, i32
  }
  func.func @transform_3(%arg0: i32, %arg1: i32) -> (i32, i32, i32) {
    %c0_i32 = arith.constant 0 : i32
    %c0_i32_0 = arith.constant 0 : i32
    return %arg0, %c0_i32, %arg1 : i32, i32, i32
  }
}

</mosaic_0001>

<bundles_post_ra>
// kernel: tpu_custom_call.1
= control target key start
LH: loop header
LB: loop body
LE: loop exit
PB: predicated region body
PF: predicated region fallthrough
CT: control target
= control target key end

     0   :  { %8 = vsyncpa [#allocation3], 0  ;;  %s6721_s0 = inlined_call_operand.vmem [shape: f32[2,18,18,4], index: 0, kind: input, shape index: {}]   ;;  %s6722_s1 = inlined_call_operand.vmem [shape: f32[9,4,128], index: 1, kind: input, shape index: {}]   ;;  %s6723_s2 = inlined_call_operand.vmem [shape: f32[1,128], index: 2, kind: input, shape index: {}]   ;;  %s6724_s3 = inlined_call_operand.hbm [shape: f32[2,256,128], index: 3, kind: output, shape index: {}]  }
   0x1   :  { %10 = vsyncpa [#allocation3 + $0x1], 0  ;;  %s5591_s12 = smov 0   ;;  %s5593_s13 = smov 0  }
   0x2   :  { %s5595_s14 = smov 0   ;;  %s5597_s15 = smov 0  }
   0x3   :  { %s5599_s16 = smov 0   ;;  %s5601_s17 = smov 0  }
   0x4 LB: > { %s3880_s18 = sadd.s32 4294967295, %s5566_s17   ;;  %s3881_s19 = sadd.s32 4294967294, %s5566_s17   ;;  %s5566_s17 = sphi %s5601_s17, %s16_s17   ;;  %s5562_s16 = sphi %s5599_s16, %s6851_s16   ;;  %s5558_s15 = sphi %s5597_s15, %s6850_s15   ;;  %s5554_s14 = sphi %s5595_s14, %s6849_s14   ;;  %s5550_s13 = sphi %s5593_s13, %s6848_s13   ;;  %s5546_s12 = sphi %s5591_s12, %s6847_s12  }
   0x5   : > { %s28_s20 = sadd.s32 1, %s5562_s16  ;;  %s115_s21 = sadd.s32 1, %s5554_s14 }
   0x6   : > { %p30_p0 = scmp.ge.s32.totalorder %s28_s20, 2  ;;  %p125_p1 = scmp.ne.s32.totalorder %s5554_s14, %s5550_s13 }
   0x7   : > { %p126_p2 = scmp.eq.s32.totalorder %s3880_s18, 1  ;;  %p131_p3 = scmp.ne.s32.totalorder %s5550_s13, %s5546_s12 }
   0x8   : > { %s6853_s20 = smov (%p30_p0, %s28_s20), 0  ;;  %p132_p5 = scmp.eq.s32.totalorder %s3881_s19, 1 }
   0x9   : > { %p5631_p4 = por %p126_p2, %p125_p1  ;;  %s110_s23 = ssub.s32 %s5562_s16, %s6853_s20 }
   0xa   : > { %p3886_p6 = scmp.ge.s32.totalorder %s5566_s17, 1  ;;  %p113_p7 = scmp.eq.s32.totalorder %s110_s23, 0 }
   0xb   : > { %p5638_p8 = por %p132_p5, %p131_p3  ;;  %p171_p9 = scmp.lt.s32.totalorder %s5566_s17, 3 }
   0xc   : > { %s5644_s25 = scalar_select %p113_p7, %s5554_s14, %s115_s21  }
   0xd   : > { %p172_p10 = pnand %p3886_p6, %p171_p9 }
   0xf   : > { %175 = sbr.rel (%p172_p10) target bundleno = 547 (0x223), region = 32 }
  0x16   : > { %v253_v0 = vld [vmem:[%s6722_s1] sm:$0xf]  ;;  %vm351_vm0 = vcmask 1043456   ;;  %v5652_v1 = vld [vmem:[%s6722_s1 + $0x10] sm:$0xf]  ;;  %p202_p11 = scmp.lt.s32.totalorder %s5558_s15, 1 }
  0x17   : > { %4690 = vmatprep.subr.msk.mxu1 %vm351_vm0, %v253_v0  ;;  %4890 = vmatprep.subr.msk.mxu0 %vm351_vm0, %v5652_v1  ;;  %v3923_v2 = vld [vmem:[%s6722_s1 + $0x4] sm:$0xf]  ;;  %v4155_v3 = vld [vmem:[%s6722_s1 + $0x14] sm:$0xf]  ;;  %vm254_vm1 = vcmask 31744   ;;  %s199_s5 = sand.u32 1, %s5550_s13  }
  0x18   : > { %4691 = vmatpush3.msk.msra.mxu1 %vm351_vm0, %v253_v0  ;;  %s203_s7 = scalar_select %p202_p11, %s5558_s15, 1  ;;  %4891 = vmatpush3.msk.msra.mxu0 %vm351_vm0, %v5652_v1  ;;  %v5698_v10 = vld [vmem:[%s6722_s1 + $0x18] sm:$0xf]  ;;  %v5703_v11 = vld [vmem:[%s6722_s1 + $0x8] sm:$0xf] }
  0x19   : > { %4740 = vmatprep.subr.msk.mxu1 %vm351_vm0, %v3923_v2  ;;  %4940 = vmatprep.subr.msk.mxu0 %vm351_vm0, %v4155_v3  ;;  %v5870_v44 = vld [vmem:[%s6722_s1 + $0x1c] sm:$0xf]  ;;  %s4392_s10 = sshll.u32 %s5558_s15, 12  ;;  %s6675_s15 = scalar_lea.sflag [#allocation3], %s199_s5 }
  0x1a   : > { %s5430_s8 = smul.u32 432, %s203_s7  ;;  %s6667_s21 = scalar_lea.hbm %s6724_s3, %s4392_s10 }
  0x1b   : > { %s5568_s26 = smov [#allocation2]  }
  0x1c   : > { %s5673_s11 = scalar_lea.vmem %s6721_s0, %s5430_s8  ;;  %s3887_s8 = sshll.u32 %s199_s5, 8 }
  0x1d   : > { %v221_v4 = vld [vmem:[%s5673_s11] sm:$0xff]  ;;  %v222_v6 = vld [vmem:[%s5673_s11 + $0x8] sm:$0xff]  ;;  %v5687_v8 = vld [vmem:[%s5673_s11 + $0x18] sm:$0xff]  ;;  %s6601_s9 = scalar_lea.vmem [#allocation2], %s3887_s8  ;;  %s5492_s27 = sshll.u32 %s5568_s26, 4  ;;  %s5493_s27 = int_to_ptr.vmem [resolvable:$false] %s5492_s27 }
  0x1e   : > { %v5677_v5 = vld [vmem:[%s5673_s11 + $0x19] sm:$0xff]  ;;  %4692 = vmatprep.mubr.msk.f32.mxu1 %vm254_vm1, %v221_v4  ;;  %v5684_v7 = vld [vmem:[%s5673_s11 + $0x21] sm:$0xff]  ;;  %6777 = vst [vmem:[#allocation5_spill] sm:$0xff] %v5687_v8  ;;  %v5690_v9 = vld [vmem:[%s5673_s11 + $0x31] sm:$0xff]  ;;  %s5494_s28 = scalar_lea.vmem %s5493_s27, 8192 }
  0x1f   : > { %4892 = vmatprep.mubr.msk.f32.mxu0 %vm254_vm1, %v5677_v5  ;;  %4693 = vmatmul.mubr.msk.f32.vlgmr.msra.gmra.mrb[0].mxu1 %vm254_vm1, %v222_v6  ;;  %v5708_v12 = vld [vmem:[%s5673_s11 + $0x20] sm:$0xff]  ;;  %v5718_v14 = vld [vmem:[%s5673_s11 + $0x30] sm:$0xff]  ;;  %v5736_v16 = vld [vmem:[%s5673_s11 + $0x38] sm:$0xff] }
  0x20   : > { %4893 = vmatmul.mubr.msk.f32.vlgmr.msra.gmra.mrb[0].mxu0 %vm254_vm1, %v5684_v7  ;;  %4741 = vmatpush3.msk.msra.mxu1 %vm351_vm0, %v3923_v2  ;;  %6778 = vst [vmem:[#allocation6_spill] sm:$0xff] %v5708_v12  ;;  %v5711_v13 = vld [vmem:[%s5673_s11 + $0x39] sm:$0xff]  ;;  %6779 = vst [vmem:[#allocation7_spill] sm:$0xff] %v5718_v14  ;;  %v5721_v15 = vld [vmem:[%s5673_s11 + $0x49] sm:$0xff] }
  0x21   : > { %4941 = vmatpush3.msk.msra.mxu0 %vm351_vm0, %v4155_v3  ;;  %4695 = vmatprep.mubr.msk.f32.mxu1 %vm254_vm1, %v5687_v8  ;;  %v5739_v17 = vld [vmem:[%s5673_s11 + $0x51] sm:$0xff]  ;;  %v5742_v18 = vld [vmem:[%s5673_s11 + $0x48] sm:$0xff]  ;;  %v5762_v22 = vld [vmem:[%s5673_s11 + $0x60] sm:$0xff] }
  0x22   : > { %4895 = vmatprep.mubr.msk.f32.mxu0 %vm254_vm1, %v5690_v9  ;;  %4990 = vmatprep.subr.msk.mxu0 %vm351_vm0, %v5698_v10  ;;  %6780 = vst [vmem:[#allocation8_spill] sm:$0xff] %v5742_v18  ;;  %v5745_v19 = vld [vmem:[%s5673_s11 + $0x61] sm:$0xff]  ;;  %v5756_v20 = vld [vmem:[%s5673_s11 + $0x50] sm:$0xff]  ;;  %6782 = vst [vmem:[#allocation10_spill] sm:$0xff] %v5762_v22 }
  0x23   : > { %4790 = vmatprep.subr.msk.mxu1 %vm351_vm0, %v5703_v11  ;;  %4696 = vmatmul.mubr.msk.f32.gmra.mrb[2].mxu1 %vm254_vm1, %v5708_v12  ;;  %6781 = vst [vmem:[#allocation9_spill] sm:$0xff] %v5756_v20  ;;  %v5759_v21 = vld [vmem:[%s5673_s11 + $0x69] sm:$0xff]  ;;  %v5765_v23 = vld [vmem:[%s5673_s11 + $0x79] sm:$0xff]  ;;  %v5779_v25 = vld [vmem:[%s5673_s11 + $0x81] sm:$0xff] }
  0x24   : > { %4896 = vmatmul.mubr.msk.f32.gmra.mrb[2].mxu0 %vm254_vm1, %v5711_v13  ;;  %4698 = vmatprep.mubr.msk.f32.mxu1 %vm254_vm1, %v5718_v14  ;;  %v5776_v24 = vld [vmem:[%s5673_s11 + $0x68] sm:$0xff]  ;;  %v5782_v26 = vld [vmem:[%s5673_s11 + $0x78] sm:$0xff]  ;;  %v5796_v28 = vld [vmem:[%s5673_s11 + $0x80] sm:$0xff] }
  0x25   : > { %4898 = vmatprep.mubr.msk.f32.mxu0 %vm254_vm1, %v5721_v15  ;;  %6783 = vst [vmem:[#allocation11_spill] sm:$0xff] %v5776_v24  ;;  %6784 = vst [vmem:[#allocation12_spill] sm:$0xff] %v5782_v26  ;;  %v5785_v27 = vld [vmem:[%s5673_s11 + $0x91] sm:$0xff]  ;;  %v5799_v29 = vld [vmem:[%s5673_s11 + $0x99] sm:$0xff] }
  0x26   : > { %6785 = vst [vmem:[#allocation13_spill] sm:$0xff] %v5796_v28  ;;  %v5802_v30 = vld [vmem:[%s5673_s11 + $0x90] sm:$0xff]  ;;  %v5816_v32 = vld [vmem:[%s5673_s11 + $0x98] sm:$0xff]  ;;  %v5822_v34 = vld [vmem:[%s5673_s11 + $0xa8] sm:$0xff] }
  0x27   : > { %4699 = vmatmul.mubr.msk.f32.gmra.mrb[4].mxu1 %vm254_vm1, %v5736_v16  ;;  %6786 = vst [vmem:[#allocation14_spill] sm:$0xff] %v5802_v30  ;;  %v5805_v31 = vld [vmem:[%s5673_s11 + $0xa9] sm:$0xff]  ;;  %6787 = vst [vmem:[#allocation15_spill] sm:$0xff] %v5816_v32  ;;  %v5819_v33 = vld [vmem:[%s5673_s11 + $0xb1] sm:$0xff] }
  0x28   : > { %4899 = vmatmul.mubr.msk.f32.gmra.mrb[4].mxu0 %vm254_vm1, %v5739_v17  ;;  %4701 = vmatprep.mubr.msk.f32.mxu1 %vm254_vm1, %v5742_v18  ;;  %6788 = vst [vmem:[#allocation16_spill] sm:$0xff] %v5822_v34  ;;  %v5825_v35 = vld [vmem:[%s5673_s11 + $0xc1] sm:$0xff]  ;;  %v5836_v36 = vld [vmem:[%s5673_s11 + $0xb0] sm:$0xff]  ;;  %v5862_v42 = vld [vmem:[%s5673_s11 + $0xd8] sm:$0xff] }
  0x29   : > { %4901 = vmatprep.mubr.msk.f32.mxu0 %vm254_vm1, %v5745_v19  ;;  %6789 = vst [vmem:[#allocation17_spill] sm:$0xff] %v5836_v36  ;;  %v5839_v37 = vld [vmem:[%s5673_s11 + $0xc9] sm:$0xff]  ;;  %v5842_v38 = vld [vmem:[%s5673_s11 + $0xc0] sm:$0xff]  ;;  %v5865_v43 = vld [vmem:[%s5673_s11 + $0x32] sm:$0xff] }
  0x2a   : > { %v5845_v39 = vld [vmem:[%s5673_s11 + $0x1a] sm:$0xff]  ;;  %v5856_v40 = vld [vmem:[%s5673_s11 + $0xc8] sm:$0xff]  ;;  %v5889_v47 = vld [vmem:[%s5673_s11 + $0xf0] sm:$0xff] }
  0x2b   : > { %4702 = vmatmul.mubr.msk.f32.gmra.mrb[6].mxu1 %vm254_vm1, %v5756_v20  ;;  %6790 = vst [vmem:[#allocation18_spill] sm:$0xff] %v5856_v40  ;;  %v5859_v41 = vld [vmem:[%s5673_s11 + $0x22] sm:$0xff]  ;;  %v5884_v46 = vld [vmem:[%s5673_s11 + $0x3a] sm:$0xff]  ;;  %v5892_v48 = vld [vmem:[%s5673_s11 + $0x4a] sm:$0xff] }
  0x2c   : > { %4902 = vmatmul.mubr.msk.f32.gmra.mrb[6].mxu0 %vm254_vm1, %v5759_v21  ;;  %4704 = vmatprep.mubr.msk.f32.mxu1 %vm254_vm1, %v5762_v22  ;;  %v5881_v45 = vld [vmem:[%s5673_s11 + $0xe0] sm:$0xff]  ;;  %v5905_v49 = vld [vmem:[%s5673_s11 + $0xf8] sm:$0xff]  ;;  %v5911_v51 = vld [vmem:[%s5673_s11 + $0x108] sm:$0xff] }
  0x2d   : > { %4904 = vmatprep.mubr.msk.f32.mxu0 %vm254_vm1, %v5765_v23  ;;  %v5908_v50 = vld [vmem:[%s5673_s11 + $0x52] sm:$0xff]  ;;  %v5914_v52 = vld [vmem:[%s5673_s11 + $0x62] sm:$0xff]  ;;  %v5928_v54 = vld [vmem:[%s5673_s11 + $0x6a] sm:$0xff] }
  0x2e   : > { %v5925_v53 = vld [vmem:[%s5673_s11 + $0x110] sm:$0xff]  ;;  %v5931_v55 = vld [vmem:[%s5673_s11 + $0x120] sm:$0xff]  ;;  %v5945_v57 = vld [vmem:[%s5673_s11 + $0x128] sm:$0xff] }
  0x2f   : > { %4705 = vmatmul.mubr.msk.f32.gmra.mrb[8].mxu1 %vm254_vm1, %v5776_v24  ;;  %v5934_v56 = vld [vmem:[%s5673_s11 + $0x7a] sm:$0xff]  ;;  %v5948_v58 = vld [vmem:[%s5673_s11 + $0x82] sm:$0xff]  ;;  %v5954_v60 = vld [vmem:[%s5673_s11 + $0x92] sm:$0xff] }
  0x30   : > { %4905 = vmatmul.mubr.msk.f32.gmra.mrb[8].mxu0 %vm254_vm1, %v5779_v25  ;;  %4707 = vmatprep.mubr.msk.f32.mxu1 %vm254_vm1, %v5782_v26  ;;  %v5951_v59 = vld [vmem:[%s5673_s11 + $0x138] sm:$0xff]  ;;  %6791 = vst [vmem:[#allocation19_spill] sm:$0xff] %v5954_v60  ;;  %v5965_v61 = vld [vmem:[%s5673_s11 + $0x140] sm:$0xff]  ;;  %v5971_v63 = vld [vmem:[%s5673_s11 + $0x150] sm:$0xff] }
  0x31   : > { %4907 = vmatprep.mubr.msk.f32.mxu0 %vm254_vm1, %v5785_v27  ;;  %v5968_v62 = vld [vmem:[%s5673_s11 + $0x9a] sm:$0xff]  ;;  %v5974_v0 = vld [vmem:[%s5673_s11 + $0xaa] sm:$0xff]  ;;  %v5988_v3 = vld [vmem:[%s5673_s11 + $0xb2] sm:$0xff] }
  0x32   : > { %6792 = vst [vmem:[#allocation20_spill] sm:$0xff] %v5968_v62  ;;  %6793 = vst [vmem:[#allocation21_spill] sm:$0xff] %v5974_v0  ;;  %v5985_v2 = vld [vmem:[%s5673_s11 + $0x158] sm:$0xff]  ;;  %v5991_v4 = vld [vmem:[%s5673_s11 + $0x168] sm:$0xff] }
  0x33   : > { %4708 = vmatmul.mubr.msk.f32.gmra.mrb[10].mxu1 %vm254_vm1, %v5796_v28  ;;  %6794 = vst [vmem:[#allocation22_spill] sm:$0xff] %v5985_v2  ;;  %6795 = vst [vmem:[#allocation23_spill] sm:$0xff] %v5988_v3  ;;  %v5994_v6 = vld [vmem:[%s5673_s11 + $0xc2] sm:$0xff]  ;;  %v6008_v12 = vld [vmem:[%s5673_s11 + $0xca] sm:$0xff] }
  0x34   : > { %4908 = vmatmul.mubr.msk.f32.gmra.mrb[10].mxu0 %vm254_vm1, %v5799_v29  ;;  %4710 = vmatprep.mubr.msk.f32.mxu1 %vm254_vm1, %v5802_v30  ;;  %6796 = vst [vmem:[#allocation24_spill] sm:$0xff] %v5991_v4  ;;  %6797 = vst [vmem:[#allocation25_spill] sm:$0xff] %v5994_v6  ;;  %v612_v8 = vld [vmem:[%s5673_s11 + $0x1] sm:$0xff] }
  0x35   : > { %4910 = vmatprep.mubr.msk.f32.mxu0 %vm254_vm1, %v5805_v31 }
  0x37   : > { %4711 = vmatmul.mubr.msk.f32.gmra.mrb[12].mxu1 %vm254_vm1, %v5816_v32 }
  0x38   : > { %4911 = vmatmul.mubr.msk.f32.gmra.mrb[12].mxu0 %vm254_vm1, %v5819_v33  ;;  %4713 = vmatprep.mubr.msk.f32.mxu1 %vm254_vm1, %v5822_v34 }
  0x39   : > { %4913 = vmatprep.mubr.msk.f32.mxu0 %vm254_vm1, %v5825_v35 }
  0x3b   : > { %4714 = vmatmul.mubr.msk.f32.gmra.mrb[14].mxu1 %vm254_vm1, %v5836_v36 }
  0x3c   : > { %4914 = vmatmul.mubr.msk.f32.gmra.mrb[14].mxu0 %vm254_vm1, %v5839_v37  ;;  %4716 = vmatprep.mubr.msk.f32.mxu1 %vm254_vm1, %v5842_v38 }
  0x3d   : > { %4942 = vmatprep.mubr.msk.f32.mxu0 %vm254_vm1, %v5845_v39 }
  0x3f   : > { %4717 = vmatmul.mubr.msk.f32.gmra.mrb[16].mxu1 %vm254_vm1, %v5856_v40 }
  0x40   : > { %4943 = vmatmul.mubr.msk.f32.vlgmr.msra.gmra.mrb[0].mxu0 %vm254_vm1, %v5859_v41  ;;  %4719 = vmatprep.mubr.msk.f32.mxu1 %vm254_vm1, %v5862_v42 }
  0x41   : > { %4991 = vmatpush3.msk.msra.mxu0 %vm351_vm0, %v5698_v10  ;;  %4945 = vmatprep.mubr.msk.f32.mxu0 %vm254_vm1, %v5865_v43  ;;  %v6005_v10 = vld [vmem:[%s5673_s11 + $0x170] sm:$0xff] }
  0x42   : > { %5040 = vmatprep.subr.msk.mxu0 %vm351_vm0, %v5870_v44  ;;  %6798 = vst [vmem:[#allocation26_spill] sm:$0xff] %v6005_v10 }
  0x43   : > { %4720 = vmatmul.mubr.msk.f32.gmra.mrb[18].mxu1 %vm254_vm1, %v5881_v45 }
  0x44   : > { %4946 = vmatmul.mubr.msk.f32.gmra.mrb[2].mxu0 %vm254_vm1, %v5884_v46  ;;  %4722 = vmatprep.mubr.msk.f32.mxu1 %vm254_vm1, %v5889_v47 }
  0x45   : > { %4948 = vmatprep.mubr.msk.f32.mxu0 %vm254_vm1, %v5892_v48 }
  0x47   : > { %4723 = vmatmul.mubr.msk.f32.gmra.mrb[20].mxu1 %vm254_vm1, %v5905_v49 }
  0x48   : > { %4949 = vmatmul.mubr.msk.f32.gmra.mrb[4].mxu0 %vm254_vm1, %v5908_v50  ;;  %4725 = vmatprep.mubr.msk.f32.mxu1 %vm254_vm1, %v5911_v51 }
  0x49   : > { %4951 = vmatprep.mubr.msk.f32.mxu0 %vm254_vm1, %v5914_v52 }
  0x4b   : > { %4726 = vmatmul.mubr.msk.f32.gmra.mrb[22].mxu1 %vm254_vm1, %v5925_v53 }
  0x4c   : > { %4952 = vmatmul.mubr.msk.f32.gmra.mrb[6].mxu0 %vm254_vm1, %v5928_v54  ;;  %4728 = vmatprep.mubr.msk.f32.mxu1 %vm254_vm1, %v5931_v55 }
  0x4d   : > { %4954 = vmatprep.mubr.msk.f32.mxu0 %vm254_vm1, %v5934_v56 }
  0x4f   : > { %4729 = vmatmul.mubr.msk.f32.gmra.mrb[24].mxu1 %vm254_vm1, %v5945_v57 }
  0x50   : > { %4955 = vmatmul.mubr.msk.f32.gmra.mrb[8].mxu0 %vm254_vm1, %v5948_v58  ;;  %4731 = vmatprep.mubr.msk.f32.mxu1 %vm254_vm1, %v5951_v59 }
  0x51   : > { %4957 = vmatprep.mubr.msk.f32.mxu0 %vm254_vm1, %v5954_v60  ;;  %v6031_v60 = vld [vmem:[%s6722_s1 + $0xc] sm:$0xf] }
  0x53   : > { %4732 = vmatmul.mubr.msk.f32.gmra.mrb[26].mxu1 %vm254_vm1, %v5965_v61 }
  0x54   : > { %4958 = vmatmul.mubr.msk.f32.gmra.mrb[10].mxu0 %vm254_vm1, %v5968_v62  ;;  %4734 = vmatprep.mubr.msk.f32.mxu1 %vm254_vm1, %v5971_v63  ;;  %v6026_v62 = vld [vmem:[%s5673_s11 + $0xf2] sm:$0xff] }
  0x55   : > { %4960 = vmatprep.mubr.msk.f32.mxu0 %vm254_vm1, %v5974_v0  ;;  %v6012_v0 = vld [vmem:[%s5673_s11 + $0xda] sm:$0xff] }
  0x56   : > { %6799 = vst [vmem:[#allocation27_spill] sm:$0xff] %v6012_v0 }
  0x57   : > { %4735 = vmatmul.mubr.msk.f32.gmra.mrb[28].mxu1 %vm254_vm1, %v5985_v2 }
  0x58   : > { %4961 = vmatmul.mubr.msk.f32.gmra.mrb[12].mxu0 %vm254_vm1, %v5988_v3  ;;  %4737 = vmatprep.mubr.msk.f32.mxu1 %vm254_vm1, %v5991_v4  ;;  %v6023_v3 = vld [vmem:[%s5673_s11 + $0xe2] sm:$0xff] }
  0x59   : > { %4963 = vmatprep.mubr.msk.f32.mxu0 %vm254_vm1, %v5994_v6  ;;  %v613_v6 = vld [vmem:[%s5673_s11 + $0x9] sm:$0xff] }
  0x5b   : > { %4738 = vmatmul.mubr.msk.f32.gmra.mrb[30].mxu1 %vm254_vm1, %v6005_v10 }
  0x5c   : > { %4964 = vmatmul.mubr.msk.f32.gmra.mrb[14].mxu0 %vm254_vm1, %v6008_v12  ;;  %4742 = vmatprep.mubr.msk.f32.mxu1 %vm254_vm1, %v612_v8  ;;  %v6041_v8 = vld [vmem:[%s5673_s11 + $0xfa] sm:$0xff] }
  0x5d   : > { %4966 = vmatprep.mubr.msk.f32.mxu0 %vm254_vm1, %v6012_v0  ;;  %v6046_v0 = vld [vmem:[%s5673_s11 + $0x10a] sm:$0xff] }
  0x5f   : > { %4743 = vmatmul.mubr.msk.f32.vlgmr.msra.gmra.mrb[0].mxu1 %vm254_vm1, %v613_v6  ;;  %v6076_v6 = vld [vmem:[%s5673_s11 + $0x13a] sm:$0xff] }
  0x60   : > { %4967 = vmatmul.mubr.msk.f32.gmra.mrb[16].mxu0 %vm254_vm1, %v6023_v3  ;;  %4791 = vmatpush3.msk.msra.mxu1 %vm351_vm0, %v5703_v11  ;;  %v6062_v11 = vld [vmem:[%s5673_s11 + $0x122] sm:$0xff]  ;;  %6803 = vst [vmem:[#allocation31_spill] sm:$0xff] %v6076_v6 }
  0x61   : > { %4745 = vmatprep.mubr.msk.f32.mxu1 %vm254_vm1, %v5677_v5  ;;  %4969 = vmatprep.mubr.msk.f32.mxu0 %vm254_vm1, %v6026_v62  ;;  %v6059_v5 = vld [vmem:[%s5673_s11 + $0x112] sm:$0xff]  ;;  %6801 = vst [vmem:[#allocation29_spill] sm:$0xff] %v6062_v11 }
  0x62   : > { %4840 = vmatprep.subr.msk.mxu1 %vm351_vm0, %v6031_v60  ;;  %6800 = vst [vmem:[#allocation28_spill] sm:$0xff] %v6059_v5 }
  0x63   : > { %4746 = vmatmul.mubr.msk.f32.gmra.mrb[2].mxu1 %vm254_vm1, %v5684_v7  ;;  %v6073_v7 = vld [vmem:[%s5673_s11 + $0x12a] sm:$0xff] }
  0x64   : > { %4970 = vmatmul.mubr.msk.f32.gmra.mrb[18].mxu0 %vm254_vm1, %v6041_v8  ;;  %4748 = vmatprep.mubr.msk.f32.mxu1 %vm254_vm1, %v5690_v9  ;;  %6802 = vst [vmem:[#allocation30_spill] sm:$0xff] %v6073_v7 }
  0x65   : > { %4972 = vmatprep.mubr.msk.f32.mxu0 %vm254_vm1, %v6046_v0 }
  0x67   : > { %4749 = vmatmul.mubr.msk.f32.gmra.mrb[4].mxu1 %vm254_vm1, %v5711_v13 }
  0x68   : > { %4973 = vmatmul.mubr.msk.f32.gmra.mrb[20].mxu0 %vm254_vm1, %v6059_v5  ;;  %4751 = vmatprep.mubr.msk.f32.mxu1 %vm254_vm1, %v5721_v15  ;;  %v6087_v5 = vld [vmem:[%s5673_s11 + $0x142] sm:$0xff] }
  0x69   : > { %4975 = vmatprep.mubr.msk.f32.mxu0 %vm254_vm1, %v6062_v11  ;;  %6804 = vst [vmem:[#allocation32_spill] sm:$0xff] %v6087_v5  ;;  %v6090_v11 = vld [vmem:[%s5673_s11 + $0x152] sm:$0xff] }
  0x6a   : > { %6805 = vst [vmem:[#allocation33_spill] sm:$0xff] %v6090_v11 }
  0x6b   : > { %4752 = vmatmul.mubr.msk.f32.gmra.mrb[6].mxu1 %vm254_vm1, %v5739_v17 }
  0x6c   : > { %4976 = vmatmul.mubr.msk.f32.gmra.mrb[22].mxu0 %vm254_vm1, %v6073_v7  ;;  %4754 = vmatprep.mubr.msk.f32.mxu1 %vm254_vm1, %v5745_v19  ;;  %v6101_v7 = vld [vmem:[%s5673_s11 + $0x15a] sm:$0xff] }
  0x6d   : > { %4978 = vmatprep.mubr.msk.f32.mxu0 %vm254_vm1, %v6076_v6  ;;  %6806 = vst [vmem:[#allocation34_spill] sm:$0xff] %v6101_v7  ;;  %v6104_v6 = vld [vmem:[%s5673_s11 + $0x16a] sm:$0xff] }
  0x6f   : > { %4755 = vmatmul.mubr.msk.f32.gmra.mrb[8].mxu1 %vm254_vm1, %v5759_v21 }
  0x70   : > { %4979 = vmatmul.mubr.msk.f32.gmra.mrb[24].mxu0 %vm254_vm1, %v6087_v5  ;;  %4757 = vmatprep.mubr.msk.f32.mxu1 %vm254_vm1, %v5765_v23  ;;  %v6115_v5 = vld [vmem:[%s5673_s11 + $0x172] sm:$0xff] }
  0x71   : > { %4981 = vmatprep.mubr.msk.f32.mxu0 %vm254_vm1, %v6090_v11  ;;  %6807 = vst [vmem:[#allocation35_spill] sm:$0xff] %v6115_v5  ;;  %v6118_v11 = vld [vmem:[%s5673_s11 + $0x182] sm:$0xff] }
  0x72   : > { %6808 = vst [vmem:[#allocation36_spill] sm:$0xff] %v6118_v11 }
  0x73   : > { %4758 = vmatmul.mubr.msk.f32.gmra.mrb[10].mxu1 %vm254_vm1, %v5779_v25 }
  0x74   : > { %4982 = vmatmul.mubr.msk.f32.gmra.mrb[26].mxu0 %vm254_vm1, %v6101_v7  ;;  %4760 = vmatprep.mubr.msk.f32.mxu1 %vm254_vm1, %v5785_v27  ;;  %v6129_v7 = vld [vmem:[%s5673_s11 + $0x18a] sm:$0xff] }
  0x75   : > { %4984 = vmatprep.mubr.msk.f32.mxu0 %vm254_vm1, %v6104_v6  ;;  %6809 = vst [vmem:[#allocation37_spill] sm:$0xff] %v6129_v7 }
  0x77   : > { %4761 = vmatmul.mubr.msk.f32.gmra.mrb[12].mxu1 %vm254_vm1, %v5799_v29 }
  0x78   : > { %4985 = vmatmul.mubr.msk.f32.gmra.mrb[28].mxu0 %vm254_vm1, %v6115_v5  ;;  %4763 = vmatprep.mubr.msk.f32.mxu1 %vm254_vm1, %v5805_v31  ;;  %v6140_v5 = vld [vmem:[%s5673_s11 + $0xd9] sm:$0xff] }
  0x79   : > { %4987 = vmatprep.mubr.msk.f32.mxu0 %vm254_vm1, %v6118_v11  ;;  %v6145_v11 = vld [vmem:[%s6722_s1 + $0x20] sm:$0xf] }
  0x7b   : > { %4764 = vmatmul.mubr.msk.f32.gmra.mrb[14].mxu1 %vm254_vm1, %v5819_v33 }
  0x7c   : > { %4988 = vmatmul.mubr.msk.f32.gmra.mrb[30].mxu0 %vm254_vm1, %v6129_v7  ;;  %4766 = vmatprep.mubr.msk.f32.mxu1 %vm254_vm1, %v5825_v35  ;;  %v6156_v7 = vld [vmem:[%s5673_s11 + $0xe1] sm:$0xff] }
  0x7d   : > { %4992 = vmatprep.mubr.msk.f32.mxu0 %vm254_vm1, %v5718_v14  ;;  %v6161_v14 = vld [vmem:[%s5673_s11 + $0xf1] sm:$0xff] }
  0x7f   : > { %4767 = vmatmul.mubr.msk.f32.gmra.mrb[16].mxu1 %vm254_vm1, %v5839_v37 }
  0x80   : > { %4993 = vmatmul.mubr.msk.f32.vlgmr.msra.gmra.mrb[0].mxu0 %vm254_vm1, %v5736_v16  ;;  %4769 = vmatprep.mubr.msk.f32.mxu1 %vm254_vm1, %v6140_v5 }
  0x81   : > { %5041 = vmatpush3.msk.msra.mxu0 %vm351_vm0, %v5870_v44  ;;  %4995 = vmatprep.mubr.msk.f32.mxu0 %vm254_vm1, %v5742_v18  ;;  %v6174_v44 = vld [vmem:[%s5673_s11 + $0xf9] sm:$0xff]  ;;  %v6177_v18 = vld [vmem:[%s5673_s11 + $0x109] sm:$0xff] }
  0x82   : > { %5090 = vmatprep.subr.msk.mxu0 %vm351_vm0, %v6145_v11 }
  0x83   : > { %4770 = vmatmul.mubr.msk.f32.gmra.mrb[18].mxu1 %vm254_vm1, %v6156_v7 }
  0x84   : > { %4996 = vmatmul.mubr.msk.f32.gmra.mrb[2].mxu0 %vm254_vm1, %v5756_v20  ;;  %4772 = vmatprep.mubr.msk.f32.mxu1 %vm254_vm1, %v6161_v14  ;;  %v6188_v20 = vld [vmem:[%s5673_s11 + $0x111] sm:$0xff] }
  0x85   : > { %4998 = vmatprep.mubr.msk.f32.mxu0 %vm254_vm1, %v5762_v22  ;;  %v6191_v22 = vld [vmem:[%s5673_s11 + $0x121] sm:$0xff] }
  0x87   : > { %4773 = vmatmul.mubr.msk.f32.gmra.mrb[20].mxu1 %vm254_vm1, %v6174_v44 }
  0x88   : > { %4999 = vmatmul.mubr.msk.f32.gmra.mrb[4].mxu0 %vm254_vm1, %v5776_v24  ;;  %4775 = vmatprep.mubr.msk.f32.mxu1 %vm254_vm1, %v6177_v18  ;;  %v6202_v24 = vld [vmem:[%s5673_s11 + $0x129] sm:$0xff] }
  0x89   : > { %5001 = vmatprep.mubr.msk.f32.mxu0 %vm254_vm1, %v5782_v26  ;;  %v6205_v26 = vld [vmem:[%s5673_s11 + $0x139] sm:$0xff] }
  0x8b   : > { %4776 = vmatmul.mubr.msk.f32.gmra.mrb[22].mxu1 %vm254_vm1, %v6188_v20 }
  0x8c   : > { %5002 = vmatmul.mubr.msk.f32.gmra.mrb[6].mxu0 %vm254_vm1, %v5796_v28  ;;  %4778 = vmatprep.mubr.msk.f32.mxu1 %vm254_vm1, %v6191_v22  ;;  %v6216_v28 = vld [vmem:[%s5673_s11 + $0x141] sm:$0xff] }
  0x8d   : > { %5004 = vmatprep.mubr.msk.f32.mxu0 %vm254_vm1, %v5802_v30  ;;  %v6219_v30 = vld [vmem:[%s5673_s11 + $0x151] sm:$0xff] }
  0x8e   : > { %6810 = vst [vmem:[#allocation38_spill] sm:$0xff] %v6219_v30 }
  0x8f   : > { %4779 = vmatmul.mubr.msk.f32.gmra.mrb[24].mxu1 %vm254_vm1, %v6202_v24 }
  0x90   : > { %5005 = vmatmul.mubr.msk.f32.gmra.mrb[8].mxu0 %vm254_vm1, %v5816_v32  ;;  %4781 = vmatprep.mubr.msk.f32.mxu1 %vm254_vm1, %v6205_v26  ;;  %v6230_v32 = vld [vmem:[%s5673_s11 + $0x159] sm:$0xff] }
  0x91   : > { %5007 = vmatprep.mubr.msk.f32.mxu0 %vm254_vm1, %v5822_v34  ;;  %v6233_v34 = vld [vmem:[%s5673_s11 + $0x169] sm:$0xff] }
  0x93   : > { %4782 = vmatmul.mubr.msk.f32.gmra.mrb[26].mxu1 %vm254_vm1, %v6216_v28 }
  0x94   : > { %5008 = vmatmul.mubr.msk.f32.gmra.mrb[10].mxu0 %vm254_vm1, %v5836_v36  ;;  %4784 = vmatprep.mubr.msk.f32.mxu1 %vm254_vm1, %v6219_v30  ;;  %v6244_v36 = vld [vmem:[%s5673_s11 + $0x171] sm:$0xff]  ;;  %v1002_v30 = vld [vmem:[%s5673_s11 + $0x2] sm:$0xff] }
  0x95   : > { %5010 = vmatprep.mubr.msk.f32.mxu0 %vm254_vm1, %v5842_v38 }
  0x97   : > { %4785 = vmatmul.mubr.msk.f32.gmra.mrb[28].mxu1 %vm254_vm1, %v6230_v32 }
  0x98   : > { %5011 = vmatmul.mubr.msk.f32.gmra.mrb[12].mxu0 %vm254_vm1, %v5856_v40  ;;  %4787 = vmatprep.mubr.msk.f32.mxu1 %vm254_vm1, %v6233_v34  ;;  %v1003_v40 = vld [vmem:[%s5673_s11 + $0xa] sm:$0xff] }
  0x99   : > { %5013 = vmatprep.mubr.msk.f32.mxu0 %vm254_vm1, %v5862_v42 }
  0x9b   : > { %4788 = vmatmul.mubr.msk.f32.gmra.mrb[30].mxu1 %vm254_vm1, %v6244_v36 }
  0x9c   : > { %5014 = vmatmul.mubr.msk.f32.gmra.mrb[14].mxu0 %vm254_vm1, %v5881_v45  ;;  %4792 = vmatprep.mubr.msk.f32.mxu1 %vm254_vm1, %v1002_v30  ;;  %v6299_v30 = vld [vmem:[%s5673_s11 + $0x180] sm:$0xff] }
  0x9d   : > { %5016 = vmatprep.mubr.msk.f32.mxu0 %vm254_vm1, %v5889_v47  ;;  %6811 = vst [vmem:[#allocation39_spill] sm:$0xff] %v6299_v30 }
  0x9f   : > { %4793 = vmatmul.mubr.msk.f32.vlgmr.msra.gmra.mrb[0].mxu1 %vm254_vm1, %v1003_v40  ;;  %v6310_v40 = vld [vmem:[%s5673_s11 + $0x188] sm:$0xff] }
  0xa0   : > { %5017 = vmatmul.mubr.msk.f32.gmra.mrb[16].mxu0 %vm254_vm1, %v5905_v49  ;;  %4841 = vmatpush3.msk.msra.mxu1 %vm351_vm0, %v6031_v60  ;;  %v6813_v60 = vld [vmem:[#allocation20_spill] sm:$0xff] }
  0xa1   : > { %4795 = vmatprep.mubr.msk.f32.mxu1 %vm254_vm1, %v5845_v39  ;;  %5019 = vmatprep.mubr.msk.f32.mxu0 %vm254_vm1, %v5911_v51  ;;  %v6812_v39 = vld [vmem:[#allocation19_spill] sm:$0xff] }
  0xa2   : > { %5140 = vmatprep.subr.msk.mxu1 %vm351_vm0, %v5652_v1 }
  0xa3   : > { %4796 = vmatmul.mubr.msk.f32.gmra.mrb[2].mxu1 %vm254_vm1, %v5859_v41  ;;  %v4219_v41 = vld [vmem:[%s5673_s11 + $0x198] sm:$0xff] }
  0xa4   : > { %5020 = vmatmul.mubr.msk.f32.gmra.mrb[18].mxu0 %vm254_vm1, %v5925_v53  ;;  %4798 = vmatprep.mubr.msk.f32.mxu1 %vm254_vm1, %v5865_v43 }
  0xa5   : > { %5022 = vmatprep.mubr.msk.f32.mxu0 %vm254_vm1, %v5931_v55 }
  0xa7   : > { %4799 = vmatmul.mubr.msk.f32.gmra.mrb[4].mxu1 %vm254_vm1, %v5884_v46 }
  0xa8   : > { %5023 = vmatmul.mubr.msk.f32.gmra.mrb[20].mxu0 %vm254_vm1, %v5945_v57  ;;  %4801 = vmatprep.mubr.msk.f32.mxu1 %vm254_vm1, %v5892_v48 }
  0xa9   : > { %5025 = vmatprep.mubr.msk.f32.mxu0 %vm254_vm1, %v5951_v59 }
  0xab   : > { %4802 = vmatmul.mubr.msk.f32.gmra.mrb[6].mxu1 %vm254_vm1, %v5908_v50 }
  0xac   : > { %5026 = vmatmul.mubr.msk.f32.gmra.mrb[22].mxu0 %vm254_vm1, %v5965_v61  ;;  %4804 = vmatprep.mubr.msk.f32.mxu1 %vm254_vm1, %v5914_v52 }
  0xad   : > { %5028 = vmatprep.mubr.msk.f32.mxu0 %vm254_vm1, %v5971_v63 }
  0xaf   : > { %4805 = vmatmul.mubr.msk.f32.gmra.mrb[8].mxu1 %vm254_vm1, %v5928_v54 }
  0xb0   : > { %5029 = vmatmul.mubr.msk.f32.gmra.mrb[24].mxu0 %vm254_vm1, %v5985_v2  ;;  %4807 = vmatprep.mubr.msk.f32.mxu1 %vm254_vm1, %v5934_v56  ;;  %v6815_v2 = vld [vmem:[#allocation23_spill] sm:$0xff] }
  0xb1   : > { %5031 = vmatprep.mubr.msk.f32.mxu0 %vm254_vm1, %v5991_v4  ;;  %v6814_v4 = vld [vmem:[#allocation21_spill] sm:$0xff] }
  0xb3   : > { %4808 = vmatmul.mubr.msk.f32.gmra.mrb[10].mxu1 %vm254_vm1, %v5948_v58 }
  0xb4   : > { %5032 = vmatmul.mubr.msk.f32.gmra.mrb[26].mxu0 %vm254_vm1, %v6005_v10  ;;  %4810 = vmatprep.mubr.msk.f32.mxu1 %vm254_vm1, %v6812_v39  ;;  %v4220_v10 = vld [vmem:[%s5673_s11 + $0x1a0] sm:$0xff] }
  0xb5   : > { %5034 = vmatprep.mubr.msk.f32.mxu0 %vm254_vm1, %v6299_v30  ;;  %v6816_v30 = vld [vmem:[#allocation25_spill] sm:$0xff] }
  0xb7   : > { %4811 = vmatmul.mubr.msk.f32.gmra.mrb[12].mxu1 %vm254_vm1, %v6813_v60 }
  0xb8   : > { %5035 = vmatmul.mubr.msk.f32.gmra.mrb[28].mxu0 %vm254_vm1, %v6310_v40  ;;  %4813 = vmatprep.mubr.msk.f32.mxu1 %vm254_vm1, %v6814_v4 }
  0xb9   : > { %5037 = vmatprep.mubr.msk.f32.mxu0 %vm254_vm1, %v4219_v41  ;;  %v6817_v41 = vld [vmem:[#allocation27_spill] sm:$0xff] }
  0xbb   : > { %4814 = vmatmul.mubr.msk.f32.gmra.mrb[14].mxu1 %vm254_vm1, %v6815_v2 }
  0xbc   : > { %5038 = vmatmul.mubr.msk.f32.gmra.mrb[30].mxu0 %vm254_vm1, %v4220_v10  ;;  %4816 = vmatprep.mubr.msk.f32.mxu1 %vm254_vm1, %v6816_v30  ;;  %v6834_v10 = vld [vmem:[#allocation38_spill] sm:$0xff] }
  0xbd   : > { %5042 = vmatprep.mubr.msk.f32.mxu0 %vm254_vm1, %v5690_v9  ;;  %v6818_v9 = vld [vmem:[#allocation28_spill] sm:$0xff] }
  0xbf   : > { %4817 = vmatmul.mubr.msk.f32.gmra.mrb[16].mxu1 %vm254_vm1, %v6008_v12 }
  0xc0   : > { %5043 = vmatmul.mubr.msk.f32.vlgmr.msra.gmra.mrb[0].mxu0 %vm254_vm1, %v5711_v13  ;;  %4819 = vmatprep.mubr.msk.f32.mxu1 %vm254_vm1, %v6817_v41  ;;  %v6819_v13 = vld [vmem:[#allocation29_spill] sm:$0xff] }
  0xc1   : > { %5091 = vmatpush3.msk.msra.mxu0 %vm351_vm0, %v6145_v11  ;;  %5045 = vmatprep.mubr.msk.f32.mxu0 %vm254_vm1, %v5721_v15  ;;  %v6820_v15 = vld [vmem:[#allocation30_spill] sm:$0xff]  ;;  %v6835_v11 = vld [vmem:[#allocation13_spill] sm:$0xff] }
  0xc3   : > { %4820 = vmatmul.mubr.msk.f32.gmra.mrb[18].mxu1 %vm254_vm1, %v6023_v3 }
  0xc4   : > { %5046 = vmatmul.mubr.msk.f32.gmra.mrb[2].mxu0 %vm254_vm1, %v5739_v17  ;;  %4822 = vmatprep.mubr.msk.f32.mxu1 %vm254_vm1, %v6026_v62  ;;  %v6821_v17 = vld [vmem:[#allocation31_spill] sm:$0xff] }
  0xc5   : > { %5048 = vmatprep.mubr.msk.f32.mxu0 %vm254_vm1, %v5745_v19  ;;  %v6822_v19 = vld [vmem:[#allocation32_spill] sm:$0xff] }
  0xc7   : > { %4823 = vmatmul.mubr.msk.f32.gmra.mrb[20].mxu1 %vm254_vm1, %v6041_v8 }
  0xc8   : > { %5049 = vmatmul.mubr.msk.f32.gmra.mrb[4].mxu0 %vm254_vm1, %v5759_v21  ;;  %4825 = vmatprep.mubr.msk.f32.mxu1 %vm254_vm1, %v6046_v0  ;;  %v6823_v21 = vld [vmem:[#allocation33_spill] sm:$0xff] }
  0xc9   : > { %5051 = vmatprep.mubr.msk.f32.mxu0 %vm254_vm1, %v5765_v23  ;;  %v6824_v23 = vld [vmem:[#allocation34_spill] sm:$0xff] }
  0xcb   : > { %4826 = vmatmul.mubr.msk.f32.gmra.mrb[22].mxu1 %vm254_vm1, %v6818_v9 }
  0xcc   : > { %5052 = vmatmul.mubr.msk.f32.gmra.mrb[6].mxu0 %vm254_vm1, %v5779_v25  ;;  %4828 = vmatprep.mubr.msk.f32.mxu1 %vm254_vm1, %v6819_v13  ;;  %v6825_v25 = vld [vmem:[#allocation35_spill] sm:$0xff] }
  0xcd   : > { %5054 = vmatprep.mubr.msk.f32.mxu0 %vm254_vm1, %v5785_v27  ;;  %v6826_v27 = vld [vmem:[#allocation5_spill] sm:$0xff] }
  0xcf   : > { %4829 = vmatmul.mubr.msk.f32.gmra.mrb[24].mxu1 %vm254_vm1, %v6820_v15 }
  0xd0   : > { %5055 = vmatmul.mubr.msk.f32.gmra.mrb[8].mxu0 %vm254_vm1, %v5799_v29  ;;  %4831 = vmatprep.mubr.msk.f32.mxu1 %vm254_vm1, %v6821_v17  ;;  %v6827_v29 = vld [vmem:[#allocation6_spill] sm:$0xff] }
  0xd1   : > { %5057 = vmatprep.mubr.msk.f32.mxu0 %vm254_vm1, %v5805_v31  ;;  %v6828_v31 = vld [vmem:[#allocation7_spill] sm:$0xff] }
  0xd3   : > { %4832 = vmatmul.mubr.msk.f32.gmra.mrb[26].mxu1 %vm254_vm1, %v6822_v19 }
  0xd4   : > { %5058 = vmatmul.mubr.msk.f32.gmra.mrb[10].mxu0 %vm254_vm1, %v5819_v33  ;;  %4834 = vmatprep.mubr.msk.f32.mxu1 %vm254_vm1, %v6823_v21  ;;  %v6829_v33 = vld [vmem:[#allocation8_spill] sm:$0xff] }
  0xd5   : > { %5060 = vmatprep.mubr.msk.f32.mxu0 %vm254_vm1, %v5825_v35  ;;  %v6831_v35 = vld [vmem:[#allocation10_spill] sm:$0xff] }
  0xd7   : > { %4835 = vmatmul.mubr.msk.f32.gmra.mrb[28].mxu1 %vm254_vm1, %v6824_v23 }
  0xd8   : > { %5061 = vmatmul.mubr.msk.f32.gmra.mrb[12].mxu0 %vm254_vm1, %v5839_v37  ;;  %4837 = vmatprep.mubr.msk.f32.mxu1 %vm254_vm1, %v6104_v6  ;;  %v6833_v37 = vld [vmem:[#allocation12_spill] sm:$0xff] }
  0xd9   : > { %5063 = vmatprep.mubr.msk.f32.mxu0 %vm254_vm1, %v6140_v5 }
  0xdb   : > { %4838 = vmatmul.mubr.msk.f32.gmra.mrb[30].mxu1 %vm254_vm1, %v6825_v25 }
  0xdc   : > { %5064 = vmatmul.mubr.msk.f32.gmra.mrb[14].mxu0 %vm254_vm1, %v6156_v7  ;;  %4842 = vmatprep.mubr.msk.f32.mxu1 %vm254_vm1, %v6826_v27  ;;  %v6836_v27 = vld [vmem:[#allocation14_spill] sm:$0xff] }
  0xdd   : > { %5066 = vmatprep.mubr.msk.f32.mxu0 %vm254_vm1, %v6161_v14 }
  0xdf   : > { %4843 = vmatmul.mubr.msk.f32.vlgmr.msra.gmra.mrb[0].mxu1 %vm254_vm1, %v6827_v29  ;;  %v6437_v29 = vld [vmem:[%s5673_s11 + $0x181] sm:$0xff] }
  0xe0   : > { %5067 = vmatmul.mubr.msk.f32.gmra.mrb[16].mxu0 %vm254_vm1, %v6174_v44  ;;  %5141 = vmatpush3.msk.msra.mxu1 %vm351_vm0, %v5652_v1  ;;  %v6830_v1 = vld [vmem:[#allocation9_spill] sm:$0xff] }
  0xe1   : > { %4845 = vmatprep.mubr.msk.f32.mxu1 %vm254_vm1, %v6828_v31  ;;  %5069 = vmatprep.mubr.msk.f32.mxu0 %vm254_vm1, %v6177_v18  ;;  %v6837_v31 = vld [vmem:[#allocation15_spill] sm:$0xff] }
  0xe3   : > { %4846 = vmatmul.mubr.msk.f32.gmra.mrb[2].mxu1 %vm254_vm1, %v5736_v16  ;;  %v6832_v16 = vld [vmem:[#allocation11_spill] sm:$0xff] }
  0xe4   : > { %5070 = vmatmul.mubr.msk.f32.gmra.mrb[18].mxu0 %vm254_vm1, %v6188_v20  ;;  %4848 = vmatprep.mubr.msk.f32.mxu1 %vm254_vm1, %v6829_v33  ;;  %v6838_v33 = vld [vmem:[#allocation16_spill] sm:$0xff] }
  0xe5   : > { %5072 = vmatprep.mubr.msk.f32.mxu0 %vm254_vm1, %v6191_v22 }
  0xe7   : > { %4849 = vmatmul.mubr.msk.f32.gmra.mrb[4].mxu1 %vm254_vm1, %v6830_v1  ;;  %v6448_v1 = vld [vmem:[%s5673_s11 + $0x189] sm:$0xff] }
  0xe8   : > { %5073 = vmatmul.mubr.msk.f32.gmra.mrb[20].mxu0 %vm254_vm1, %v6202_v24  ;;  %4851 = vmatprep.mubr.msk.f32.mxu1 %vm254_vm1, %v6831_v35  ;;  %v4285_v35 = vld [vmem:[%s5673_s11 + $0x199] sm:$0xff] }
  0xe9   : > { %5075 = vmatprep.mubr.msk.f32.mxu0 %vm254_vm1, %v6205_v26 }
  0xeb   : > { %4852 = vmatmul.mubr.msk.f32.gmra.mrb[6].mxu1 %vm254_vm1, %v6832_v16  ;;  %v6839_v16 = vld [vmem:[#allocation17_spill] sm:$0xff] }
  0xec   : > { %5076 = vmatmul.mubr.msk.f32.gmra.mrb[22].mxu0 %vm254_vm1, %v6216_v28  ;;  %4854 = vmatprep.mubr.msk.f32.mxu1 %vm254_vm1, %v6833_v37  ;;  %v4286_v37 = vld [vmem:[%s5673_s11 + $0x1a1] sm:$0xff] }
  0xed   : > { %5078 = vmatprep.mubr.msk.f32.mxu0 %vm254_vm1, %v6834_v10 }
  0xef   : > { %4855 = vmatmul.mubr.msk.f32.gmra.mrb[8].mxu1 %vm254_vm1, %v6835_v11  ;;  %v6840_v11 = vld [vmem:[#allocation18_spill] sm:$0xff] }
  0xf0   : > { %5079 = vmatmul.mubr.msk.f32.gmra.mrb[24].mxu0 %vm254_vm1, %v6230_v32  ;;  %4857 = vmatprep.mubr.msk.f32.mxu1 %vm254_vm1, %v6836_v27 }
  0xf1   : > { %5081 = vmatprep.mubr.msk.f32.mxu0 %vm254_vm1, %v6233_v34 }
  0xf3   : > { %4858 = vmatmul.mubr.msk.f32.gmra.mrb[10].mxu1 %vm254_vm1, %v6837_v31 }
  0xf4   : > { %5082 = vmatmul.mubr.msk.f32.gmra.mrb[26].mxu0 %vm254_vm1, %v6244_v36  ;;  %4860 = vmatprep.mubr.msk.f32.mxu1 %vm254_vm1, %v6838_v33 }
  0xf5   : > { %5084 = vmatprep.mubr.msk.f32.mxu0 %vm254_vm1, %v6437_v29 }
  0xf7   : > { %4861 = vmatmul.mubr.msk.f32.gmra.mrb[12].mxu1 %vm254_vm1, %v6839_v16 }
  0xf8   : > { %5085 = vmatmul.mubr.msk.f32.gmra.mrb[28].mxu0 %vm254_vm1, %v6448_v1  ;;  %4863 = vmatprep.mubr.msk.f32.mxu1 %vm254_vm1, %v5842_v38  ;;  %v6841_v38 = vld [vmem:[#allocation22_spill] sm:$0xff] }
  0xf9   : > { %5087 = vmatprep.mubr.msk.f32.mxu0 %vm254_vm1, %v4285_v35 }
  0xfb   : > { %4864 = vmatmul.mubr.msk.f32.gmra.mrb[14].mxu1 %vm254_vm1, %v6840_v11 }
  0xfc   : > { %5088 = vmatmul.mubr.msk.f32.gmra.mrb[30].mxu0 %vm254_vm1, %v4286_v37  ;;  %4866 = vmatprep.mubr.msk.f32.mxu1 %vm254_vm1, %v5862_v42  ;;  %v6842_v42 = vld [vmem:[#allocation24_spill] sm:$0xff] }
  0xfd   : > { %5092 = vmatprep.mubr.msk.f32.mxu0 %vm254_vm1, %v5865_v43  ;;  %v6843_v43 = vld [vmem:[#allocation26_spill] sm:$0xff] }
  0xff   : > { %4867 = vmatmul.mubr.msk.f32.gmra.mrb[16].mxu1 %vm254_vm1, %v5881_v45  ;;  %v6844_v45 = vld [vmem:[#allocation39_spill] sm:$0xff] }
 0x100   : > { %5093 = vmatmul.mubr.msk.f32.vlgmr.msra.gmra.mrb[0].mxu0 %vm254_vm1, %v5884_v46  ;;  %4869 = vmatprep.mubr.msk.f32.mxu1 %vm254_vm1, %v5889_v47 }
 0x101   : > { %5095 = vmatprep.mubr.msk.f32.mxu0 %vm254_vm1, %v5892_v48 }
 0x103   : > { %4870 = vmatmul.mubr.msk.f32.gmra.mrb[18].mxu1 %vm254_vm1, %v5905_v49 }
 0x104   : > { %5096 = vmatmul.mubr.msk.f32.gmra.mrb[2].mxu0 %vm254_vm1, %v5908_v50  ;;  %4872 = vmatprep.mubr.msk.f32.mxu1 %vm254_vm1, %v5911_v51 }
 0x105   : > { %5098 = vmatprep.mubr.msk.f32.mxu0 %vm254_vm1, %v5914_v52 }
 0x107   : > { %4873 = vmatmul.mubr.msk.f32.gmra.mrb[20].mxu1 %vm254_vm1, %v5925_v53  ;;  %v6594_v53 = vld [vmem:[%s6723_s2] ss:$0 sm:$0xff] }
 0x108   : > { %5099 = vmatmul.mubr.msk.f32.gmra.mrb[4].mxu0 %vm254_vm1, %v5928_v54  ;;  %4875 = vmatprep.mubr.msk.f32.mxu1 %vm254_vm1, %v5931_v55 }
 0x109   : > { %5101 = vmatprep.mubr.msk.f32.mxu0 %vm254_vm1, %v5934_v56 }
 0x10b   : > { %4876 = vmatmul.mubr.msk.f32.gmra.mrb[22].mxu1 %vm254_vm1, %v5945_v57 }
 0x10c   : > { %5102 = vmatmul.mubr.msk.f32.gmra.mrb[6].mxu0 %vm254_vm1, %v5948_v58  ;;  %4878 = vmatprep.mubr.msk.f32.mxu1 %vm254_vm1, %v5951_v59 }
 0x10d   : > { %5104 = vmatprep.mubr.msk.f32.mxu0 %vm254_vm1, %v6812_v39 }
 0x10f   : > { %4879 = vmatmul.mubr.msk.f32.gmra.mrb[24].mxu1 %vm254_vm1, %v5965_v61 }
 0x110   : > { %5105 = vmatmul.mubr.msk.f32.gmra.mrb[8].mxu0 %vm254_vm1, %v6813_v60  ;;  %4881 = vmatprep.mubr.msk.f32.mxu1 %vm254_vm1, %v5971_v63 }
 0x111   : > { %5107 = vmatprep.mubr.msk.f32.mxu0 %vm254_vm1, %v6814_v4 }
 0x113   : > { %4882 = vmatmul.mubr.msk.f32.gmra.mrb[26].mxu1 %vm254_vm1, %v6841_v38 }
 0x114   : > { %5108 = vmatmul.mubr.msk.f32.gmra.mrb[10].mxu0 %vm254_vm1, %v6815_v2  ;;  %4884 = vmatprep.mubr.msk.f32.mxu1 %vm254_vm1, %v6842_v42 }
 0x115   : > { %5110 = vmatprep.mubr.msk.f32.mxu0 %vm254_vm1, %v6816_v30 }
 0x117   : > { %4885 = vmatmul.mubr.msk.f32.gmra.mrb[28].mxu1 %vm254_vm1, %v6843_v43 }
 0x118   : > { %5111 = vmatmul.mubr.msk.f32.gmra.mrb[12].mxu0 %vm254_vm1, %v6008_v12  ;;  %4887 = vmatprep.mubr.msk.f32.mxu1 %vm254_vm1, %v6844_v45  ;;  %v6845_v12 = vld [vmem:[#allocation36_spill] sm:$0xff] }
 0x119   : > { %5113 = vmatprep.mubr.msk.f32.mxu0 %vm254_vm1, %v6817_v41 }
 0x11b   : > { %4888 = vmatmul.mubr.msk.f32.gmra.mrb[30].mxu1 %vm254_vm1, %v6310_v40 }
 0x11c   : > { %5114 = vmatmul.mubr.msk.f32.gmra.mrb[14].mxu0 %vm254_vm1, %v6023_v3  ;;  %4916 = vmatprep.mubr.msk.f32.mxu1 %vm254_vm1, %v6140_v5 }
 0x11d   : > { %5116 = vmatprep.mubr.msk.f32.mxu0 %vm254_vm1, %v6026_v62 }
 0x11f   : > { %4917 = vmatmul.mubr.msk.f32.vlgmr.msra.gmra.mrb[16].mxu1 %vm254_vm1, %v6156_v7 }
 0x120   : > { %5117 = vmatmul.mubr.msk.f32.gmra.mrb[16].mxu0 %vm254_vm1, %v6041_v8  ;;  %4919 = vmatprep.mubr.msk.f32.mxu1 %vm254_vm1, %v6161_v14  ;;  %v4351_v14 = vld [vmem:[%s5673_s11 + $0x19a] sm:$0xff] }
 0x121   : > { %5119 = vmatprep.mubr.msk.f32.mxu0 %vm254_vm1, %v6046_v0 }
 0x123   : > { %4920 = vmatmul.mubr.msk.f32.gmra.mrb[18].mxu1 %vm254_vm1, %v6174_v44 }
 0x124   : > { %5120 = vmatmul.mubr.msk.f32.gmra.mrb[18].mxu0 %vm254_vm1, %v6818_v9  ;;  %4922 = vmatprep.mubr.msk.f32.mxu1 %vm254_vm1, %v6177_v18  ;;  %v6846_v18 = vld [vmem:[#allocation37_spill] sm:$0xff] }
 0x125   : > { %5122 = vmatprep.mubr.msk.f32.mxu0 %vm254_vm1, %v6819_v13 }
 0x127   : > { %4923 = vmatmul.mubr.msk.f32.gmra.mrb[20].mxu1 %vm254_vm1, %v6188_v20  ;;  %v4352_v20 = vld [vmem:[%s5673_s11 + $0x1a2] sm:$0xff]  ;;  %s3781_s11 = sshll.u32 %s6601_s9, 4  ;;  %s6669_s11 = int_to_ptr.vmem [resolvable:$true] %s3781_s11 }
 0x128   : > { %5123 = vmatmul.mubr.msk.f32.gmra.mrb[20].mxu0 %vm254_vm1, %v6820_v15  ;;  %4925 = vmatprep.mubr.msk.f32.mxu1 %vm254_vm1, %v6191_v22  ;;  %s5488_s23 = scalar_lea.vmem %s6669_s11, 4096  ;;  %p5495_p1 = scmp.lt.s32.totalorder %s6669_s11, %s5493_s27 }
 0x129   : > { %5125 = vmatprep.mubr.msk.f32.mxu0 %vm254_vm1, %v6821_v17  ;;  %p5489_p12 = scmp.ne.s32.totalorder %s6669_s11, %s5488_s23  ;;  %p5496_p2 = scmp.lt.s32.totalorder %s5494_s28, %s5488_s23 }
 0x12b   : > { %4926 = vmatmul.mubr.msk.f32.gmra.mrb[22].mxu1 %vm254_vm1, %v6202_v24  ;;  %p5490_p13 = pnand %p5489_p12, %p5631_p4  ;;  %p5497_p3 = por %p5496_p2, %p5495_p1 }
 0x12c   : > { %5126 = vmatmul.mubr.msk.f32.gmra.mrb[22].mxu0 %vm254_vm1, %v6822_v19  ;;  %4928 = vmatprep.mubr.msk.f32.mxu1 %vm254_vm1, %v6205_v26 }
 0x12d   : > { %5128 = vmatprep.mubr.msk.f32.mxu0 %vm254_vm1, %v6823_v21  ;;  %p5491_p0 = pneg %p5490_p13 }
 0x12f   : > { %4929 = vmatmul.mubr.msk.f32.gmra.mrb[24].mxu1 %vm254_vm1, %v6216_v28  ;;  %p5498_p5 = pnand %p5497_p3, %p5491_p0 }
 0x130   : > { %5129 = vmatmul.mubr.msk.f32.gmra.mrb[24].mxu0 %vm254_vm1, %v6824_v23  ;;  %4931 = vmatprep.mubr.msk.f32.mxu1 %vm254_vm1, %v6834_v10 }
 0x131   : > { %5131 = vmatprep.mubr.msk.f32.mxu0 %vm254_vm1, %v6104_v6 }
 0x133   : > { %4932 = vmatmul.mubr.msk.f32.gmra.mrb[26].mxu1 %vm254_vm1, %v6230_v32 }
 0x134   : > { %5132 = vmatmul.mubr.msk.f32.gmra.mrb[26].mxu0 %vm254_vm1, %v6825_v25  ;;  %4934 = vmatprep.mubr.msk.f32.mxu1 %vm254_vm1, %v6233_v34 }
 0x135   : > { %5134 = vmatprep.mubr.msk.f32.mxu0 %vm254_vm1, %v6845_v12 }
 0x137   : > { %4935 = vmatmul.mubr.msk.f32.gmra.mrb[28].mxu1 %vm254_vm1, %v6244_v36 }
 0x138   : > { %5135 = vmatmul.mubr.msk.f32.gmra.mrb[28].mxu0 %vm254_vm1, %v6846_v18  ;;  %4937 = vmatprep.mubr.msk.f32.mxu1 %vm254_vm1, %v6437_v29 }
 0x139   : > { %5137 = vmatprep.mubr.msk.f32.mxu0 %vm254_vm1, %v4351_v14 }
 0x13b   : > { %4938 = vmatmul.mubr.msk.f32.gmra.mrb[30].mxu1 %vm254_vm1, %v6448_v1 }
 0x13c   : > { %5138 = vmatmul.mubr.msk.f32.gmra.mrb[30].mxu0 %vm254_vm1, %v4352_v20 }
 0x1b2   : > { %v4844_v22 = vpop.f32.mrb[0].mxu1 }
 0x1b3   : > { %v1592_v24 = vpop.f32.mrb[1].mxu1  ;;  %v5142_v56 = vadd.f32 %v4844_v22, %v6594_v53 }
 0x1b4   : > { %v5144_v57 = vadd.f32 %v6594_v53, %v1592_v24 }
 0x1b6   : > { %v4847_v26 = vpop.f32.mrb[2].mxu1 }
 0x1b7   : > { %v1602_v28 = vpop.f32.mrb[3].mxu1  ;;  %v5146_v63 = vadd.f32 %v4847_v26, %v6594_v53 }
 0x1b8   : > { %v5148_v0 = vadd.f32 %v6594_v53, %v1602_v28 }
 0x1ba   : > { %v4850_v32 = vpop.f32.mrb[4].mxu1 }
 0x1bb   : > { %v1612_v34 = vpop.f32.mrb[5].mxu1  ;;  %v5150_v5 = vadd.f32 %v4850_v32, %v6594_v53 }
 0x1bc   : > { %v5152_v7 = vadd.f32 %v6594_v53, %v1612_v34 }
 0x1be   : > { %v4853_v36 = vpop.f32.mrb[6].mxu1 }
 0x1bf   : > { %v1622_v46 = vpop.f32.mrb[7].mxu1  ;;  %v5154_v40 = vadd.f32 %v4853_v36, %v6594_v53 }
 0x1c0   : > { %v5156_v60 = vadd.f32 %v6594_v53, %v1622_v46 }
 0x1c2   : > { %v4856_v47 = vpop.f32.mrb[8].mxu1 }
 0x1c3   : > { %v1632_v48 = vpop.f32.mrb[9].mxu1  ;;  %v5158_v17 = vadd.f32 %v4856_v47, %v6594_v53 }
 0x1c4   : > { %v5160_v19 = vadd.f32 %v6594_v53, %v1632_v48 }
 0x1c6   : > { %v4859_v49 = vpop.f32.mrb[10].mxu1 }
 0x1c7   : > { %v1642_v50 = vpop.f32.mrb[11].mxu1  ;;  %v5162_v27 = vadd.f32 %v4859_v49, %v6594_v53 }
 0x1c8   : > { %v5164_v29 = vadd.f32 %v6594_v53, %v1642_v50 }
 0x1ca   : > { %v4862_v51 = vpop.f32.mrb[12].mxu1 }
 0x1cb   : > { %v1652_v52 = vpop.f32.mrb[13].mxu1  ;;  %v5166_v16 = vadd.f32 %v4862_v51, %v6594_v53 }
 0x1cc   : > { %v5168_v37 = vadd.f32 %v6594_v53, %v1652_v52 }
 0x1ce   : > { %v4865_v54 = vpop.f32.mrb[14].mxu1 }
 0x1cf   : > { %v1662_v55 = vpop.f32.mrb[15].mxu1  ;;  %v5170_v45 = vadd.f32 %v4865_v54, %v6594_v53 }
 0x1d0   : > { %v5172_v12 = vadd.f32 %v6594_v53, %v1662_v55 }
 0x1d3   : > { %v5094_v58 = vpop.f32.mrb[0].mxu0 }
 0x1d4   : > { %v5143_v59 = vadd.f32 %v5142_v56, %v5094_v58  ;;  %v3543_v61 = vpop.f32.mrb[1].mxu0 }
 0x1d5   : > { %v5145_v62 = vadd.f32 %v5144_v57, %v3543_v61 }
 0x1d6   : > { %3735 = vst [vmem:[%s6601_s9 + $0x8] sm:$0xff] %v5143_v59 }
 0x1d7   : > { %3734 = vst [vmem:[%s6601_s9] sm:$0xff] %v5145_v62  ;;  %v5097_v2 = vpop.f32.mrb[2].mxu0 }
 0x1d8   : > { %v5147_v3 = vadd.f32 %v5146_v63, %v5097_v2  ;;  %v3553_v4 = vpop.f32.mrb[3].mxu0 }
 0x1d9   : > { %v5149_v8 = vadd.f32 %v5148_v0, %v3553_v4 }
 0x1da   : > { %3737 = vst [vmem:[%s6601_s9 + $0x18] sm:$0xff] %v5147_v3 }
 0x1db   : > { %3736 = vst [vmem:[%s6601_s9 + $0x10] sm:$0xff] %v5149_v8  ;;  %v5100_v6 = vpop.f32.mrb[4].mxu0 }
 0x1dc   : > { %v5151_v44 = vadd.f32 %v5150_v5, %v5100_v6  ;;  %v3563_v30 = vpop.f32.mrb[5].mxu0 }
 0x1dd   : > { %v5153_v39 = vadd.f32 %v5152_v7, %v3563_v30 }
 0x1de   : > { %3739 = vst [vmem:[%s6601_s9 + $0x28] sm:$0xff] %v5151_v44 }
 0x1df   : > { %3738 = vst [vmem:[%s6601_s9 + $0x20] sm:$0xff] %v5153_v39  ;;  %v5103_v41 = vpop.f32.mrb[6].mxu0 }
 0x1e0   : > { %v5155_v9 = vadd.f32 %v5154_v40, %v5103_v41  ;;  %v3573_v13 = vpop.f32.mrb[7].mxu0 }
 0x1e1   : > { %v5157_v15 = vadd.f32 %v5156_v60, %v3573_v13 }
 0x1e2   : > { %3741 = vst [vmem:[%s6601_s9 + $0x38] sm:$0xff] %v5155_v9 }
 0x1e3   : > { %3740 = vst [vmem:[%s6601_s9 + $0x30] sm:$0xff] %v5157_v15  ;;  %v5106_v21 = vpop.f32.mrb[8].mxu0 }
 0x1e4   : > { %v5159_v23 = vadd.f32 %v5158_v17, %v5106_v21  ;;  %v3583_v25 = vpop.f32.mrb[9].mxu0 }
 0x1e5   : > { %v5161_v10 = vadd.f32 %v5160_v19, %v3583_v25 }
 0x1e6   : > { %3743 = vst [vmem:[%s6601_s9 + $0x48] sm:$0xff] %v5159_v23 }
 0x1e7   : > { %3742 = vst [vmem:[%s6601_s9 + $0x40] sm:$0xff] %v5161_v10  ;;  %v5109_v31 = vpop.f32.mrb[10].mxu0 }
 0x1e8   : > { %v5163_v33 = vadd.f32 %v5162_v27, %v5109_v31  ;;  %v3593_v1 = vpop.f32.mrb[11].mxu0 }
 0x1e9   : > { %v5165_v35 = vadd.f32 %v5164_v29, %v3593_v1 }
 0x1ea   : > { %3745 = vst [vmem:[%s6601_s9 + $0x58] sm:$0xff] %v5163_v33 }
 0x1eb   : > { %3744 = vst [vmem:[%s6601_s9 + $0x50] sm:$0xff] %v5165_v35  ;;  %v5112_v11 = vpop.f32.mrb[12].mxu0 }
 0x1ec   : > { %v5167_v38 = vadd.f32 %v5166_v16, %v5112_v11  ;;  %v3603_v42 = vpop.f32.mrb[13].mxu0 }
 0x1ed   : > { %v5169_v43 = vadd.f32 %v5168_v37, %v3603_v42 }
 0x1ee   : > { %3747 = vst [vmem:[%s6601_s9 + $0x68] sm:$0xff] %v5167_v38 }
 0x1ef   : > { %3746 = vst [vmem:[%s6601_s9 + $0x60] sm:$0xff] %v5169_v43  ;;  %v5115_v14 = vpop.f32.mrb[14].mxu0 }
 0x1f0   : > { %v5171_v18 = vadd.f32 %v5170_v45, %v5115_v14  ;;  %v3613_v20 = vpop.f32.mrb[15].mxu0 }
 0x1f1   : > { %v5173_v22 = vadd.f32 %v5172_v12, %v3613_v20 }
 0x1f2   : > { %3749 = vst [vmem:[%s6601_s9 + $0x78] sm:$0xff] %v5171_v18  ;;  %v4918_v24 = vpop.f32.mrb[16].mxu1 }
 0x1f3   : > { %3748 = vst [vmem:[%s6601_s9 + $0x70] sm:$0xff] %v5173_v22  ;;  %v5118_v26 = vpop.f32.mrb[16].mxu0  ;;  %v5174_v28 = vadd.f32 %v4918_v24, %v6594_v53  ;;  %v2062_v32 = vpop.f32.mrb[17].mxu1 }
 0x1f4   : > { %v3623_v34 = vpop.f32.mrb[17].mxu0  ;;  %v5176_v36 = vadd.f32 %v6594_v53, %v2062_v32 }
 0x1f5   : > { %v5175_v46 = vadd.f32 %v5174_v28, %v5118_v26 }
 0x1f6   : > { %v5177_v47 = vadd.f32 %v5176_v36, %v3623_v34  ;;  %v4921_v48 = vpop.f32.mrb[18].mxu1 }
 0x1f7   : > { %v5121_v49 = vpop.f32.mrb[18].mxu0  ;;  %3751 = vst [vmem:[%s6601_s9 + $0x88] sm:$0xff] %v5175_v46  ;;  %v5178_v50 = vadd.f32 %v4921_v48, %v6594_v53  ;;  %v2072_v51 = vpop.f32.mrb[19].mxu1 }
 0x1f8   : > { %v3633_v52 = vpop.f32.mrb[19].mxu0  ;;  %3750 = vst [vmem:[%s6601_s9 + $0x80] sm:$0xff] %v5177_v47  ;;  %v5180_v54 = vadd.f32 %v6594_v53, %v2072_v51 }
 0x1f9   : > { %v5179_v55 = vadd.f32 %v5178_v50, %v5121_v49 }
 0x1fa   : > { %v5181_v56 = vadd.f32 %v5180_v54, %v3633_v52  ;;  %v4924_v57 = vpop.f32.mrb[20].mxu1 }
 0x1fb   : > { %v5124_v58 = vpop.f32.mrb[20].mxu0  ;;  %3753 = vst [vmem:[%s6601_s9 + $0x98] sm:$0xff] %v5179_v55  ;;  %v5182_v59 = vadd.f32 %v4924_v57, %v6594_v53  ;;  %v2082_v61 = vpop.f32.mrb[21].mxu1 }
 0x1fc   : > { %v3643_v62 = vpop.f32.mrb[21].mxu0  ;;  %3752 = vst [vmem:[%s6601_s9 + $0x90] sm:$0xff] %v5181_v56  ;;  %v5184_v63 = vadd.f32 %v6594_v53, %v2082_v61 }
 0x1fd   : > { %v5183_v0 = vadd.f32 %v5182_v59, %v5124_v58 }
 0x1fe   : > { %v5185_v2 = vadd.f32 %v5184_v63, %v3643_v62  ;;  %v4927_v3 = vpop.f32.mrb[22].mxu1 }
 0x1ff   : > { %v5127_v4 = vpop.f32.mrb[22].mxu0  ;;  %3755 = vst [vmem:[%s6601_s9 + $0xa8] sm:$0xff] %v5183_v0  ;;  %v5186_v8 = vadd.f32 %v4927_v3, %v6594_v53  ;;  %v2092_v5 = vpop.f32.mrb[23].mxu1 }
 0x200   : > { %v3653_v7 = vpop.f32.mrb[23].mxu0  ;;  %3754 = vst [vmem:[%s6601_s9 + $0xa0] sm:$0xff] %v5185_v2  ;;  %v5188_v6 = vadd.f32 %v6594_v53, %v2092_v5 }
 0x201   : > { %v5187_v44 = vadd.f32 %v5186_v8, %v5127_v4 }
 0x202   : > { %v5189_v30 = vadd.f32 %v5188_v6, %v3653_v7  ;;  %v4930_v39 = vpop.f32.mrb[24].mxu1 }
 0x203   : > { %v5130_v40 = vpop.f32.mrb[24].mxu0  ;;  %3757 = vst [vmem:[%s6601_s9 + $0xb8] sm:$0xff] %v5187_v44  ;;  %v5190_v60 = vadd.f32 %v4930_v39, %v6594_v53  ;;  %v2102_v41 = vpop.f32.mrb[25].mxu1 }
 0x204   : > { %v3663_v9 = vpop.f32.mrb[25].mxu0  ;;  %3756 = vst [vmem:[%s6601_s9 + $0xb0] sm:$0xff] %v5189_v30  ;;  %v5192_v13 = vadd.f32 %v6594_v53, %v2102_v41 }
 0x205   : > { %v5191_v15 = vadd.f32 %v5190_v60, %v5130_v40 }
 0x206   : > { %v5193_v17 = vadd.f32 %v5192_v13, %v3663_v9  ;;  %v4933_v19 = vpop.f32.mrb[26].mxu1 }
 0x207   : > { %v5133_v21 = vpop.f32.mrb[26].mxu0  ;;  %3759 = vst [vmem:[%s6601_s9 + $0xc8] sm:$0xff] %v5191_v15  ;;  %v5194_v23 = vadd.f32 %v4933_v19, %v6594_v53  ;;  %v2112_v25 = vpop.f32.mrb[27].mxu1 }
 0x208   : > { %v3673_v10 = vpop.f32.mrb[27].mxu0  ;;  %3758 = vst [vmem:[%s6601_s9 + $0xc0] sm:$0xff] %v5193_v17  ;;  %v5196_v27 = vadd.f32 %v6594_v53, %v2112_v25 }
 0x209   : > { %v5195_v29 = vadd.f32 %v5194_v23, %v5133_v21 }
 0x20a   : > { %v5197_v31 = vadd.f32 %v5196_v27, %v3673_v10  ;;  %v4936_v33 = vpop.f32.mrb[28].mxu1 }
 0x20b   : > { %v5136_v1 = vpop.f32.mrb[28].mxu0  ;;  %3761 = vst [vmem:[%s6601_s9 + $0xd8] sm:$0xff] %v5195_v29  ;;  %v5198_v35 = vadd.f32 %v4936_v33, %v6594_v53  ;;  %v2122_v16 = vpop.f32.mrb[29].mxu1 }
 0x20c   : > { %v3683_v37 = vpop.f32.mrb[29].mxu0  ;;  %3760 = vst [vmem:[%s6601_s9 + $0xd0] sm:$0xff] %v5197_v31  ;;  %v5200_v11 = vadd.f32 %v6594_v53, %v2122_v16 }
 0x20d   : > { %v5199_v38 = vadd.f32 %v5198_v35, %v5136_v1 }
 0x20e   : > { %v5201_v42 = vadd.f32 %v5200_v11, %v3683_v37  ;;  %v4939_v43 = vpop.f32.mrb[30].mxu1 }
 0x20f   : > { %v5139_v45 = vpop.f32.mrb[30].mxu0  ;;  %3763 = vst [vmem:[%s6601_s9 + $0xe8] sm:$0xff] %v5199_v38  ;;  %v5202_v12 = vadd.f32 %v4939_v43, %v6594_v53  ;;  %v2132_v14 = vpop.f32.mrb[31].mxu1 }
 0x210   : > { %v3693_v18 = vpop.f32.mrb[31].mxu0  ;;  %3762 = vst [vmem:[%s6601_s9 + $0xe0] sm:$0xff] %v5201_v42  ;;  %v5204_v20 = vadd.f32 %v6594_v53, %v2132_v14 }
 0x211   : > { %v5203_v22 = vadd.f32 %v5202_v12, %v5139_v45 }
 0x212   : > { %v5205_v24 = vadd.f32 %v5204_v20, %v3693_v18 }
 0x213   : > { %3765 = vst [vmem:[%s6601_s9 + $0xf8] sm:$0xff] %v5203_v22 }
 0x214   : > { %3764 = vst [vmem:[%s6601_s9 + $0xf0] sm:$0xff] %v5205_v24 }
 0x215   : > { %5501 = shalt.err (!%p5498_p5)
}
 0x216   : > { %s5502_s29 = scalar_lea.hbm %s6667_s21, 4096  ;;  %s5506_s5 = scalar_lea.hbm %s6724_s3, 8192 }
 0x217   : > { %p5503_p6 = scmp.ne.s32.totalorder %s6667_s21, %s5502_s29  ;;  %p5507_p10 = scmp.lt.u32.totalorder %s6667_s21, %s6724_s3 }
 0x218   : > { %p5508_p11 = scmp.lt.u32.totalorder %s5506_s5, %s5502_s29  ;;  %p5510_p13 = scmp.lt.u32.totalorder %s5502_s29, %s6667_s21 }
 0x219   : > { %p5504_p7 = pnand %p5503_p6, %p5631_p4 }
 0x21a   : > { %p5509_p12 = por %p5508_p11, %p5507_p10 }
 0x21b   : > { %p5505_p9 = pneg %p5504_p7 }
 0x21c   : > { %p5511_p0 = por %p5510_p13, %p5509_p12 }
 0x21e   : > { %p5512_p1 = pnand %p5511_p0, %p5505_p9 }
 0x220   : > { %5515 = shalt.err (!%p5512_p1)
}
 0x221   : > { %s5569_s8 = smov 128   ;;  %s5570_s9 = smov 8  }
 0x222   : > { %5431 = dma.vmem_to_hbm [thread:$0]  (%p5631_p4), %s6669_s11, 4096, %s6667_s21, %s6675_s15, %s5569_s8, %s5569_s8, %s5570_s9  }
 0x223 PF: > { %p5437_p2 = scmp.ge.s32.totalorder %s5566_s17, 2  ;;  %s3796_s10 = sand.u32 1, %s5546_s12  }
 0x224   : > { %s3797_s18 = scalar_lea.sflag [#allocation3], %s3796_s10 }
 0x225   : > { %p5434_p3 = pnand %p5437_p2, %p5638_p8 }
 0x227   : > { %5541 = dma.done.wait (!%p5434_p3), %s3797_s18, 4096  }
 0x228   : > { %5543 = vsyncadd (!%p5434_p3), %s3797_s18, 4294963200  ;;  %s16_s17 = sadd.s32 1, %s5566_s17   ;;  %s6847_s12 = smov %s5550_s13 }
 0x229   : > { %p13_p5 = scmp.ge.s32.totalorder %s16_s17, 4   ;;  %s6848_s13 = smov %s5554_s14 }
 0x22a   : > { %s6849_s14 = smov %s5644_s25  ;;  %s6850_s15 = smov %s5562_s16 }
 0x22b   : > { %s6851_s16 = smov %s6853_s20  ;;  %15 = sbr.rel (!%p13_p5) target bundleno = 4 (0x4), region = 83 }
 0x232   :  { %3802 = vsyncpa [#allocation3], 1 }
 0x233   :  { %3804 = vsyncpa [#allocation3 + $0x1], 1 }

</bundles_post_ra>
